<compile_context>
chip_gen: v7x
topology: tpu7x:2x2x1
jax: 0.10.0
libtpu: 0.0.40
codegen_flags: <defaults>
</compile_context>

<pallas_src>
import functools

import jax
import jax.numpy as jnp
from jax.experimental import pallas as pl
from jax.experimental.pallas import tpu as pltpu

EPS = 1e-5


# ------------------------------ fused kernel ------------------------------- #

def bottleneck_kernel(*refs, H, W, identity_res):
    if identity_res:
        (x_ref, w1_ref, s1_ref, t1_ref, w2_ref, s2_ref, t2_ref,
         w3_ref, s3_ref, t3_ref, o_ref) = refs
        weq_ref = teq_ref = None
    else:
        (x_ref, w1_ref, s1_ref, t1_ref, w2_ref, s2_ref, t2_ref,
         w3_ref, s3_ref, t3_ref, weq_ref, teq_ref, o_ref) = refs

    n = H * W
    mid = w2_ref.shape[-1]
    x2d = x_ref[0]                                   # (H*W, cin), bf16

    # ---- stage 1: 1x1 conv + BN + ReLU (bf16 x bf16 -> f32 on the MXU) ----
    h1 = jnp.dot(x2d, w1_ref[...], preferred_element_type=jnp.float32)
    h1 = jnp.maximum(h1 * s1_ref[...] + t1_ref[...], 0.0)
    # Snap to the bf16 grid once; the per-tap bf16 casts below are then exact.
    h1 = h1.astype(jnp.bfloat16).astype(jnp.float32)

    # ---- stage 2: 3x3 conv (pad=1) + BN + ReLU as 9 shifted matmuls -------
    # The image stays flattened: a (ky, kx) tap is a shift by (ky-1)*W+(kx-1)
    # rows of a zero-halo'd slab -> one contiguous sublane slice per tap.
    # Column wrap-around is killed with an iota mask, built once per kx.
    pad = 2 * W                                      # halo rows per side
    zeros = jnp.zeros((pad, mid), jnp.float32)       # (pad % W == 0 keeps the
    h1p = jnp.concatenate([zeros, h1, zeros], axis=0)  # column math trivial)
    col = jax.lax.broadcasted_iota(jnp.int32, (h1p.shape[0], 1), 0) % W

    shifted = []                                     # per dx in (-1, 0, +1)
    for dx in (-1, 0, 1):
        if dx == 0:
            shifted.append(h1p)
        else:
            keep = jnp.logical_and(col - dx >= 0, col - dx < W)
            shifted.append(jnp.where(keep, h1p, 0.0))

    acc = jnp.zeros((n, mid), jnp.float32)
    for ky in range(3):
        for kx in range(3):
            start = pad + (ky - 1) * W + (kx - 1)
            tap = shifted[kx][start:start + n, :]
            acc = acc + jnp.dot(tap.astype(jnp.bfloat16),
                                w2_ref[ky * 3 + kx],
                                preferred_element_type=jnp.float32)
    h2 = jnp.maximum(acc * s2_ref[...] + t2_ref[...], 0.0).astype(jnp.bfloat16)

    # ---- stage 3: 1x1 conv + BN + ReLU, fused residual add ----------------
    y = jnp.dot(h2, w3_ref[...], preferred_element_type=jnp.float32)
    y = jnp.maximum(y * s3_ref[...] + t3_ref[...], 0.0)

    if identity_res:
        res = x2d.astype(jnp.float32)                # identity shortcut
    else:
        res = jnp.dot(x2d, weq_ref[...], preferred_element_type=jnp.float32)
        res = res + teq_ref[...]                     # plain conv bias (no BN)

    o_ref[0] = (y + res).astype(o_ref.dtype)


# ------------------------------ parameters --------------------------------- #

def init_params(key, in_dim, mid_dim, out_dim):
    ks = iter(jax.random.split(key, 32))

    def nrm(shape, s=0.1):
        return jax.random.normal(next(ks), shape, jnp.float32) * s

    def bn(c):
        return dict(
            g=jax.random.uniform(next(ks), (c,), jnp.float32, 0.8, 1.2),
            b=nrm((c,)),
            m=nrm((c,)),
            v=jax.random.uniform(next(ks), (c,), jnp.float32, 0.5, 1.5),
        )

    return dict(
        w1=nrm((1, 1, in_dim, mid_dim)), b1=nrm((mid_dim,)), bn1=bn(mid_dim),
        w2=nrm((3, 3, mid_dim, mid_dim)), b2=nrm((mid_dim,)), bn2=bn(mid_dim),
        w3=nrm((1, 1, mid_dim, out_dim)), b3=nrm((out_dim,)), bn3=bn(out_dim),
        weq=nrm((1, 1, in_dim, out_dim)), beq=nrm((out_dim,)),  # dim_equalizer
        wds=nrm((1, 1, in_dim, out_dim)), bds=nrm((out_dim,)),  # downsample
    )


def fold_bn(bias, bn):
    scale = bn['g'] * jax.lax.rsqrt(bn['v'] + EPS)
    shift = (bias - bn['m']) * scale + bn['b']
    return (scale.reshape(1, -1).astype(jnp.float32),
            shift.reshape(1, -1).astype(jnp.float32))


# ------------------------------ forward pass -------------------------------- #

def bottleneck_forward(x_nchw, p, down=False):
    """BottleNeck.forward. Input/output NCHW (PyTorch convention)."""
    x = jnp.transpose(x_nchw, (0, 2, 3, 1)).astype(jnp.float32)   # -> NHWC
    if down:
        # stride-2 of a 1x1 conv == subsample then stride-1 conv (both paths)
        x = x[:, ::2, ::2, :]
    B, H, W, cin = x.shape
    mid = p['w1'].shape[-1]
    cout = p['w3'].shape[-1]

    s1, t1 = fold_bn(p['b1'], p['bn1'])
    s2, t2 = fold_bn(p['b2'], p['bn2'])
    s3, t3 = fold_bn(p['b3'], p['bn3'])

    bf16 = jnp.bfloat16
    x_flat = x.reshape(B, H * W, cin).astype(bf16)   # halve HBM read traffic
    w1 = p['w1'].reshape(cin, mid).astype(bf16)
    w2 = p['w2'].reshape(9, mid, mid).astype(bf16)
    w3 = p['w3'].reshape(mid, cout).astype(bf16)

    identity_res = (not down) and (cin == cout)

    args = [x_flat, w1, s1, t1, w2, s2, t2, w3, s3, t3]
    in_specs = [
        pl.BlockSpec((1, H * W, cin), lambda b: (b, 0, 0)),
        pl.BlockSpec((cin, mid), lambda b: (0, 0)),
        pl.BlockSpec((1, mid), lambda b: (0, 0)),
        pl.BlockSpec((1, mid), lambda b: (0, 0)),
        pl.BlockSpec((9, mid, mid), lambda b: (0, 0, 0)),
        pl.BlockSpec((1, mid), lambda b: (0, 0)),
        pl.BlockSpec((1, mid), lambda b: (0, 0)),
        pl.BlockSpec((mid, cout), lambda b: (0, 0)),
        pl.BlockSpec((1, cout), lambda b: (0, 0)),
        pl.BlockSpec((1, cout), lambda b: (0, 0)),
    ]
    if not identity_res:
        if down:
            weq, beq = p['wds'], p['bds']            # downsample residual
        else:
            weq, beq = p['weq'], p['beq']            # dim_equalizer residual
        args += [weq.reshape(cin, cout).astype(bf16),
                 beq.reshape(1, cout).astype(jnp.float32)]
        in_specs += [pl.BlockSpec((cin, cout), lambda b: (0, 0)),
                     pl.BlockSpec((1, cout), lambda b: (0, 0))]

    kern = functools.partial(bottleneck_kernel, H=H, W=W,
                             identity_res=identity_res)
    out = pl.pallas_call(
        kern,
        out_shape=jax.ShapeDtypeStruct((B, H * W, cout), jnp.float32),
        grid=(B,),
        in_specs=in_specs,
        out_specs=pl.BlockSpec((1, H * W, cout), lambda b: (b, 0, 0)),
        compiler_params=pltpu.CompilerParams(
            dimension_semantics=("parallel",)),
    )(*args)
    out = out.reshape(B, H, W, cout)
    return jnp.transpose(out, (0, 3, 1, 2))                        # -> NCHW


# --------------------------- pure-JAX reference ----------------------------- #

_DN = ('NHWC', 'HWIO', 'NHWC')


def ref_forward(x_nchw, p, down=False):
    """Reference that mirrors the kernel's bf16-operand rounding."""
    x = jnp.transpose(x_nchw, (0, 2, 3, 1)).astype(jnp.float32)

    def q(a):   # operands are rounded to bf16 before hitting the MXU
        return a.astype(jnp.bfloat16).astype(jnp.float32)

    def conv(h, w, b, stride, pad):
        y = jax.lax.conv_general_dilated(q(h), q(w), (stride, stride), pad,
                                         dimension_numbers=_DN)
        return y + b

    def cbr(h, w, b, bn, stride, pad):
        y = conv(h, w, b, stride, pad)
        y = (y - bn['m']) / jnp.sqrt(bn['v'] + EPS) * bn['g'] + bn['b']
        return jnp.maximum(y, 0.0)

    h = cbr(x, p['w1'], p['b1'], p['bn1'], 2 if down else 1, 'VALID')
    h = cbr(h, p['w2'], p['b2'], p['bn2'], 1, ((1, 1), (1, 1)))
    h = cbr(h, p['w3'], p['b3'], p['bn3'], 1, 'VALID')
    if down:
        res = conv(x, p['wds'], p['bds'], 2, 'VALID')
    elif x.shape[-1] != h.shape[-1]:
        res = conv(x, p['weq'], p['beq'], 1, 'VALID')
    else:
        res = q(x)
    return jnp.transpose(h + res, (0, 3, 1, 2))


# ----------------------------------- main ----------------------------------- #

if __name__ == "__main__":
    key = jax.random.PRNGKey(0)
    kx, kp, kp2 = jax.random.split(key, 3)

    in_dim, mid_dim, out_dim = 4, 4, 8
    x = jax.random.normal(kx, (2, in_dim, 16, 16), jnp.float32)   # NCHW

    params = init_params(kp, in_dim, mid_dim, out_dim)
    errs = []

    # projection residual (dim_equalizer), stride 1
    out = jax.block_until_ready(bottleneck_forward(x, params, down=False))
    assert out.shape == (2, out_dim, 16, 16), out.shape
    errs.append(float(jnp.max(jnp.abs(out - ref_forward(x, params, down=False)))))

    # downsample case (stride 2 + downsample conv residual)
    out_d = jax.block_until_ready(bottleneck_forward(x, params, down=True))
    assert out_d.shape == (2, out_dim, 8, 8), out_d.shape
    errs.append(float(jnp.max(jnp.abs(out_d - ref_forward(x, params, down=True)))))

    # identity residual (cin == cout, no down)
    params_id = init_params(kp2, out_dim, mid_dim, out_dim)
    x_id = jax.random.normal(kx, (2, out_dim, 16, 16), jnp.float32)
    out_i = jax.block_until_ready(bottleneck_forward(x_id, params_id, down=False))
    assert out_i.shape == (2, out_dim, 16, 16), out_i.shape
    errs.append(float(jnp.max(jnp.abs(out_i - ref_forward(x_id, params_id, down=False)))))

    assert max(errs) < 1e-2, f"max abs errs {errs}"
    print("KERNEL_OK")
</pallas_src>

<mosaic_0001>
module attributes {stable_mosaic.version = 11 : i64} {
  func.func @bottleneck_kernel(%arg0: i32, %arg1: memref<1x256x4xbf16, #tpu.memory_space<vmem>>, %arg2: memref<4x4xbf16, #tpu.memory_space<vmem>>, %arg3: memref<1x4xf32, #tpu.memory_space<vmem>>, %arg4: memref<1x4xf32, #tpu.memory_space<vmem>>, %arg5: memref<9x4x4xbf16, #tpu.memory_space<vmem>>, %arg6: memref<1x4xf32, #tpu.memory_space<vmem>>, %arg7: memref<1x4xf32, #tpu.memory_space<vmem>>, %arg8: memref<4x8xbf16, #tpu.memory_space<vmem>>, %arg9: memref<1x8xf32, #tpu.memory_space<vmem>>, %arg10: memref<1x8xf32, #tpu.memory_space<vmem>>, %arg11: memref<4x8xbf16, #tpu.memory_space<vmem>>, %arg12: memref<1x8xf32, #tpu.memory_space<vmem>>, %arg13: memref<1x256x8xf32, #tpu.memory_space<vmem>>) attributes {dimension_semantics = [#tpu.dimension_semantics<parallel>], iteration_bounds = array<i64: 2>, scalar_prefetch = 0 : i64, scratch_operands = 0 : i64, tpu.core_type = #tpu.core_type<tc>, window_params = [{transform_indices = @transform_0, window_bounds = array<i64: 1, 256, 4>}, {pipeline_mode = #tpu.pipeline_mode<synchronous>, transform_indices = @transform_1, window_bounds = array<i64: 4, 4>}, {pipeline_mode = #tpu.pipeline_mode<synchronous>, transform_indices = @transform_2, window_bounds = array<i64: 1, 4>}, {pipeline_mode = #tpu.pipeline_mode<synchronous>, transform_indices = @transform_3, window_bounds = array<i64: 1, 4>}, {pipeline_mode = #tpu.pipeline_mode<synchronous>, transform_indices = @transform_4, window_bounds = array<i64: 9, 4, 4>}, {pipeline_mode = #tpu.pipeline_mode<synchronous>, transform_indices = @transform_5, window_bounds = array<i64: 1, 4>}, {pipeline_mode = #tpu.pipeline_mode<synchronous>, transform_indices = @transform_6, window_bounds = array<i64: 1, 4>}, {pipeline_mode = #tpu.pipeline_mode<synchronous>, transform_indices = @transform_7, window_bounds = array<i64: 4, 8>}, {pipeline_mode = #tpu.pipeline_mode<synchronous>, transform_indices = @transform_8, window_bounds = array<i64: 1, 8>}, {pipeline_mode = #tpu.pipeline_mode<synchronous>, transform_indices = @transform_9, window_bounds = array<i64: 1, 8>}, {pipeline_mode = #tpu.pipeline_mode<synchronous>, transform_indices = @transform_10, window_bounds = array<i64: 4, 8>}, {pipeline_mode = #tpu.pipeline_mode<synchronous>, transform_indices = @transform_11, window_bounds = array<i64: 1, 8>}, {transform_indices = @transform_12, window_bounds = array<i64: 1, 256, 8>}]} {
    %c0 = arith.constant 0 : index
    %c0_0 = arith.constant 0 : index
    %c0_1 = arith.constant 0 : index
    %0 = vector.load %arg1[%c0, %c0_0, %c0_1] : memref<1x256x4xbf16, #tpu.memory_space<vmem>>, vector<1x256x4xbf16>
    %1 = vector.shape_cast %0 : vector<1x256x4xbf16> to vector<256x4xbf16>
    %c0_2 = arith.constant 0 : index
    %c0_3 = arith.constant 0 : index
    %2 = vector.load %arg2[%c0_2, %c0_3] : memref<4x4xbf16, #tpu.memory_space<vmem>>, vector<4x4xbf16>
    %cst = arith.constant dense<0.000000e+00> : vector<256x4xf32>
    %3 = tpu.matmul %1, %2, %cst {dimension_numbers = #tpu.dot_dimension_numbers<[1], [0], [0], [1], [0, 0, 1, 1], [], []>} : vector<256x4xbf16>, vector<4x4xbf16>, vector<256x4xf32> -> vector<256x4xf32>
    %c0_4 = arith.constant 0 : index
    %c0_5 = arith.constant 0 : index
    %4 = vector.load %arg3[%c0_4, %c0_5] : memref<1x4xf32, #tpu.memory_space<vmem>>, vector<1x4xf32>
    %5 = vector.broadcast %4 : vector<1x4xf32> to vector<256x4xf32>
    %6 = arith.mulf %3, %5 : vector<256x4xf32>
    %c0_6 = arith.constant 0 : index
    %c0_7 = arith.constant 0 : index
    %7 = vector.load %arg4[%c0_6, %c0_7] : memref<1x4xf32, #tpu.memory_space<vmem>>, vector<1x4xf32>
    %8 = vector.broadcast %7 : vector<1x4xf32> to vector<256x4xf32>
    %9 = arith.addf %6, %8 : vector<256x4xf32>
    %cst_8 = arith.constant 0.000000e+00 : f32
    %10 = vector.broadcast %cst_8 : f32 to vector<256x4xf32>
    %11 = arith.maximumf %9, %10 : vector<256x4xf32>
    %12 = arith.truncf %11 : vector<256x4xf32> to vector<256x4xbf16>
    %13 = arith.extf %12 : vector<256x4xbf16> to vector<256x4xf32>
    %cst_9 = arith.constant 0.000000e+00 : f32
    %14 = vector.broadcast %cst_9 : f32 to vector<32x4xf32>
    %15 = tpu.concatenate %14, %13, %14 in 0 : vector<32x4xf32>, vector<256x4xf32>, vector<32x4xf32> -> vector<320x4xf32>
    %16 = tpu.iota {dimensions = array<i32: 0>} : vector<320x1xi32>
    %c16_i32 = arith.constant 16 : i32
    %c0_i32 = arith.constant 0 : i32
    %17 = arith.cmpi eq, %c16_i32, %c0_i32 : i32
    %c1_i32 = arith.constant 1 : i32
    %18 = arith.select %17, %c1_i32, %c16_i32 : i32
    %19 = vector.broadcast %18 : i32 to vector<320x1xi32>
    %20 = arith.remsi %16, %19 : vector<320x1xi32>
    %c0_i32_10 = arith.constant 0 : i32
    %21 = vector.broadcast %c0_i32_10 : i32 to vector<320x1xi32>
    %22 = arith.cmpi ne, %20, %21 : vector<320x1xi32>
    %c0_i32_11 = arith.constant 0 : i32
    %23 = vector.broadcast %c0_i32_11 : i32 to vector<320x1xi32>
    %24 = arith.cmpi slt, %20, %23 : vector<320x1xi32>
    %c0_i32_12 = arith.constant 0 : i32
    %25 = arith.cmpi slt, %18, %c0_i32_12 : i32
    %26 = vector.broadcast %25 : i1 to vector<320x1xi1>
    %27 = vector.broadcast %26 : vector<320x1xi1> to vector<320x1xi1>
    %28 = arith.xori %24, %27 : vector<320x1xi1>
    %29 = arith.andi %28, %22 : vector<320x1xi1>
    %30 = vector.broadcast %18 : i32 to vector<320x1xi32>
    %31 = arith.addi %20, %30 : vector<320x1xi32>
    %32 = arith.select %29, %31, %20 : vector<320x1xi1>, vector<320x1xi32>
    %c-1_i32 = arith.constant -1 : i32
    %33 = vector.broadcast %c-1_i32 : i32 to vector<320x1xi32>
    %34 = arith.subi %32, %33 : vector<320x1xi32>
    %c0_i32_13 = arith.constant 0 : i32
    %35 = vector.broadcast %c0_i32_13 : i32 to vector<320x1xi32>
    %36 = arith.cmpi sge, %34, %35 : vector<320x1xi32>
    %c-1_i32_14 = arith.constant -1 : i32
    %37 = vector.broadcast %c-1_i32_14 : i32 to vector<320x1xi32>
    %38 = arith.subi %32, %37 : vector<320x1xi32>
    %c16_i32_15 = arith.constant 16 : i32
    %39 = vector.broadcast %c16_i32_15 : i32 to vector<320x1xi32>
    %40 = arith.cmpi slt, %38, %39 : vector<320x1xi32>
    %41 = arith.andi %36, %40 : vector<320x1xi1>
    %cst_16 = arith.constant 0.000000e+00 : f32
    %42 = vector.shape_cast %41 : vector<320x1xi1> to vector<320x1xi1>
    %43 = vector.broadcast %42 : vector<320x1xi1> to vector<320x4xi1>
    %44 = vector.broadcast %cst_16 : f32 to vector<320x4xf32>
    %45 = arith.select %43, %15, %44 : vector<320x4xi1>, vector<320x4xf32>
    %c1_i32_17 = arith.constant 1 : i32
    %46 = vector.broadcast %c1_i32_17 : i32 to vector<320x1xi32>
    %47 = arith.subi %32, %46 : vector<320x1xi32>
    %c0_i32_18 = arith.constant 0 : i32
    %48 = vector.broadcast %c0_i32_18 : i32 to vector<320x1xi32>
    %49 = arith.cmpi sge, %47, %48 : vector<320x1xi32>
    %c1_i32_19 = arith.constant 1 : i32
    %50 = vector.broadcast %c1_i32_19 : i32 to vector<320x1xi32>
    %51 = arith.subi %32, %50 : vector<320x1xi32>
    %c16_i32_20 = arith.constant 16 : i32
    %52 = vector.broadcast %c16_i32_20 : i32 to vector<320x1xi32>
    %53 = arith.cmpi slt, %51, %52 : vector<320x1xi32>
    %54 = arith.andi %49, %53 : vector<320x1xi1>
    %cst_21 = arith.constant 0.000000e+00 : f32
    %55 = vector.shape_cast %54 : vector<320x1xi1> to vector<320x1xi1>
    %56 = vector.broadcast %55 : vector<320x1xi1> to vector<320x4xi1>
    %57 = vector.broadcast %cst_21 : f32 to vector<320x4xf32>
    %58 = arith.select %56, %15, %57 : vector<320x4xi1>, vector<320x4xf32>
    %cst_22 = arith.constant 0.000000e+00 : f32
    %59 = vector.broadcast %cst_22 : f32 to vector<256x4xf32>
    %60 = vector.extract_strided_slice %45 {offsets = [15, 0], sizes = [256, 4], strides = [1, 1]} : vector<320x4xf32> to vector<256x4xf32>
    %61 = arith.truncf %60 : vector<256x4xf32> to vector<256x4xbf16>
    %c0_23 = arith.constant 0 : index
    %c0_24 = arith.constant 0 : index
    %c0_25 = arith.constant 0 : index
    %62 = vector.load %arg5[%c0_23, %c0_24, %c0_25] : memref<9x4x4xbf16, #tpu.memory_space<vmem>>, vector<1x4x4xbf16>
    %63 = vector.shape_cast %62 : vector<1x4x4xbf16> to vector<4x4xbf16>
    %cst_26 = arith.constant dense<0.000000e+00> : vector<256x4xf32>
    %64 = tpu.matmul %61, %63, %cst_26 {dimension_numbers = #tpu.dot_dimension_numbers<[1], [0], [0], [1], [0, 0, 1, 1], [], []>} : vector<256x4xbf16>, vector<4x4xbf16>, vector<256x4xf32> -> vector<256x4xf32>
    %65 = arith.addf %59, %64 : vector<256x4xf32>
    %66 = vector.extract_strided_slice %15 {offsets = [16, 0], sizes = [256, 4], strides = [1, 1]} : vector<320x4xf32> to vector<256x4xf32>
    %67 = arith.truncf %66 : vector<256x4xf32> to vector<256x4xbf16>
    %c1 = arith.constant 1 : index
    %c0_27 = arith.constant 0 : index
    %c0_28 = arith.constant 0 : index
    %68 = vector.load %arg5[%c1, %c0_27, %c0_28] : memref<9x4x4xbf16, #tpu.memory_space<vmem>>, vector<1x4x4xbf16>
    %69 = vector.shape_cast %68 : vector<1x4x4xbf16> to vector<4x4xbf16>
    %cst_29 = arith.constant dense<0.000000e+00> : vector<256x4xf32>
    %70 = tpu.matmul %67, %69, %cst_29 {dimension_numbers = #tpu.dot_dimension_numbers<[1], [0], [0], [1], [0, 0, 1, 1], [], []>} : vector<256x4xbf16>, vector<4x4xbf16>, vector<256x4xf32> -> vector<256x4xf32>
    %71 = arith.addf %65, %70 : vector<256x4xf32>
    %72 = vector.extract_strided_slice %58 {offsets = [17, 0], sizes = [256, 4], strides = [1, 1]} : vector<320x4xf32> to vector<256x4xf32>
    %73 = arith.truncf %72 : vector<256x4xf32> to vector<256x4xbf16>
    %c2 = arith.constant 2 : index
    %c0_30 = arith.constant 0 : index
    %c0_31 = arith.constant 0 : index
    %74 = vector.load %arg5[%c2, %c0_30, %c0_31] : memref<9x4x4xbf16, #tpu.memory_space<vmem>>, vector<1x4x4xbf16>
    %75 = vector.shape_cast %74 : vector<1x4x4xbf16> to vector<4x4xbf16>
    %cst_32 = arith.constant dense<0.000000e+00> : vector<256x4xf32>
    %76 = tpu.matmul %73, %75, %cst_32 {dimension_numbers = #tpu.dot_dimension_numbers<[1], [0], [0], [1], [0, 0, 1, 1], [], []>} : vector<256x4xbf16>, vector<4x4xbf16>, vector<256x4xf32> -> vector<256x4xf32>
    %77 = arith.addf %71, %76 : vector<256x4xf32>
    %78 = vector.extract_strided_slice %45 {offsets = [31, 0], sizes = [256, 4], strides = [1, 1]} : vector<320x4xf32> to vector<256x4xf32>
    %79 = arith.truncf %78 : vector<256x4xf32> to vector<256x4xbf16>
    %c3 = arith.constant 3 : index
    %c0_33 = arith.constant 0 : index
    %c0_34 = arith.constant 0 : index
    %80 = vector.load %arg5[%c3, %c0_33, %c0_34] : memref<9x4x4xbf16, #tpu.memory_space<vmem>>, vector<1x4x4xbf16>
    %81 = vector.shape_cast %80 : vector<1x4x4xbf16> to vector<4x4xbf16>
    %cst_35 = arith.constant dense<0.000000e+00> : vector<256x4xf32>
    %82 = tpu.matmul %79, %81, %cst_35 {dimension_numbers = #tpu.dot_dimension_numbers<[1], [0], [0], [1], [0, 0, 1, 1], [], []>} : vector<256x4xbf16>, vector<4x4xbf16>, vector<256x4xf32> -> vector<256x4xf32>
    %83 = arith.addf %77, %82 : vector<256x4xf32>
    %84 = vector.extract_strided_slice %15 {offsets = [32, 0], sizes = [256, 4], strides = [1, 1]} : vector<320x4xf32> to vector<256x4xf32>
    %85 = arith.truncf %84 : vector<256x4xf32> to vector<256x4xbf16>
    %c4 = arith.constant 4 : index
    %c0_36 = arith.constant 0 : index
    %c0_37 = arith.constant 0 : index
    %86 = vector.load %arg5[%c4, %c0_36, %c0_37] : memref<9x4x4xbf16, #tpu.memory_space<vmem>>, vector<1x4x4xbf16>
    %87 = vector.shape_cast %86 : vector<1x4x4xbf16> to vector<4x4xbf16>
    %cst_38 = arith.constant dense<0.000000e+00> : vector<256x4xf32>
    %88 = tpu.matmul %85, %87, %cst_38 {dimension_numbers = #tpu.dot_dimension_numbers<[1], [0], [0], [1], [0, 0, 1, 1], [], []>} : vector<256x4xbf16>, vector<4x4xbf16>, vector<256x4xf32> -> vector<256x4xf32>
    %89 = arith.addf %83, %88 : vector<256x4xf32>
    %90 = vector.extract_strided_slice %58 {offsets = [33, 0], sizes = [256, 4], strides = [1, 1]} : vector<320x4xf32> to vector<256x4xf32>
    %91 = arith.truncf %90 : vector<256x4xf32> to vector<256x4xbf16>
    %c5 = arith.constant 5 : index
    %c0_39 = arith.constant 0 : index
    %c0_40 = arith.constant 0 : index
    %92 = vector.load %arg5[%c5, %c0_39, %c0_40] : memref<9x4x4xbf16, #tpu.memory_space<vmem>>, vector<1x4x4xbf16>
    %93 = vector.shape_cast %92 : vector<1x4x4xbf16> to vector<4x4xbf16>
    %cst_41 = arith.constant dense<0.000000e+00> : vector<256x4xf32>
    %94 = tpu.matmul %91, %93, %cst_41 {dimension_numbers = #tpu.dot_dimension_numbers<[1], [0], [0], [1], [0, 0, 1, 1], [], []>} : vector<256x4xbf16>, vector<4x4xbf16>, vector<256x4xf32> -> vector<256x4xf32>
    %95 = arith.addf %89, %94 : vector<256x4xf32>
    %96 = vector.extract_strided_slice %45 {offsets = [47, 0], sizes = [256, 4], strides = [1, 1]} : vector<320x4xf32> to vector<256x4xf32>
    %97 = arith.truncf %96 : vector<256x4xf32> to vector<256x4xbf16>
    %c6 = arith.constant 6 : index
    %c0_42 = arith.constant 0 : index
    %c0_43 = arith.constant 0 : index
    %98 = vector.load %arg5[%c6, %c0_42, %c0_43] : memref<9x4x4xbf16, #tpu.memory_space<vmem>>, vector<1x4x4xbf16>
    %99 = vector.shape_cast %98 : vector<1x4x4xbf16> to vector<4x4xbf16>
    %cst_44 = arith.constant dense<0.000000e+00> : vector<256x4xf32>
    %100 = tpu.matmul %97, %99, %cst_44 {dimension_numbers = #tpu.dot_dimension_numbers<[1], [0], [0], [1], [0, 0, 1, 1], [], []>} : vector<256x4xbf16>, vector<4x4xbf16>, vector<256x4xf32> -> vector<256x4xf32>
    %101 = arith.addf %95, %100 : vector<256x4xf32>
    %102 = vector.extract_strided_slice %15 {offsets = [48, 0], sizes = [256, 4], strides = [1, 1]} : vector<320x4xf32> to vector<256x4xf32>
    %103 = arith.truncf %102 : vector<256x4xf32> to vector<256x4xbf16>
    %c7 = arith.constant 7 : index
    %c0_45 = arith.constant 0 : index
    %c0_46 = arith.constant 0 : index
    %104 = vector.load %arg5[%c7, %c0_45, %c0_46] : memref<9x4x4xbf16, #tpu.memory_space<vmem>>, vector<1x4x4xbf16>
    %105 = vector.shape_cast %104 : vector<1x4x4xbf16> to vector<4x4xbf16>
    %cst_47 = arith.constant dense<0.000000e+00> : vector<256x4xf32>
    %106 = tpu.matmul %103, %105, %cst_47 {dimension_numbers = #tpu.dot_dimension_numbers<[1], [0], [0], [1], [0, 0, 1, 1], [], []>} : vector<256x4xbf16>, vector<4x4xbf16>, vector<256x4xf32> -> vector<256x4xf32>
    %107 = arith.addf %101, %106 : vector<256x4xf32>
    %108 = vector.extract_strided_slice %58 {offsets = [49, 0], sizes = [256, 4], strides = [1, 1]} : vector<320x4xf32> to vector<256x4xf32>
    %109 = arith.truncf %108 : vector<256x4xf32> to vector<256x4xbf16>
    %c8 = arith.constant 8 : index
    %c0_48 = arith.constant 0 : index
    %c0_49 = arith.constant 0 : index
    %110 = vector.load %arg5[%c8, %c0_48, %c0_49] : memref<9x4x4xbf16, #tpu.memory_space<vmem>>, vector<1x4x4xbf16>
    %111 = vector.shape_cast %110 : vector<1x4x4xbf16> to vector<4x4xbf16>
    %cst_50 = arith.constant dense<0.000000e+00> : vector<256x4xf32>
    %112 = tpu.matmul %109, %111, %cst_50 {dimension_numbers = #tpu.dot_dimension_numbers<[1], [0], [0], [1], [0, 0, 1, 1], [], []>} : vector<256x4xbf16>, vector<4x4xbf16>, vector<256x4xf32> -> vector<256x4xf32>
    %113 = arith.addf %107, %112 : vector<256x4xf32>
    %c0_51 = arith.constant 0 : index
    %c0_52 = arith.constant 0 : index
    %114 = vector.load %arg6[%c0_51, %c0_52] : memref<1x4xf32, #tpu.memory_space<vmem>>, vector<1x4xf32>
    %115 = vector.broadcast %114 : vector<1x4xf32> to vector<256x4xf32>
    %116 = arith.mulf %113, %115 : vector<256x4xf32>
    %c0_53 = arith.constant 0 : index
    %c0_54 = arith.constant 0 : index
    %117 = vector.load %arg7[%c0_53, %c0_54] : memref<1x4xf32, #tpu.memory_space<vmem>>, vector<1x4xf32>
    %118 = vector.broadcast %117 : vector<1x4xf32> to vector<256x4xf32>
    %119 = arith.addf %116, %118 : vector<256x4xf32>
    %cst_55 = arith.constant 0.000000e+00 : f32
    %120 = vector.broadcast %cst_55 : f32 to vector<256x4xf32>
    %121 = arith.maximumf %119, %120 : vector<256x4xf32>
    %122 = arith.truncf %121 : vector<256x4xf32> to vector<256x4xbf16>
    %c0_56 = arith.constant 0 : index
    %c0_57 = arith.constant 0 : index
    %123 = vector.load %arg8[%c0_56, %c0_57] : memref<4x8xbf16, #tpu.memory_space<vmem>>, vector<4x8xbf16>
    %cst_58 = arith.constant dense<0.000000e+00> : vector<256x8xf32>
    %124 = tpu.matmul %122, %123, %cst_58 {dimension_numbers = #tpu.dot_dimension_numbers<[1], [0], [0], [1], [0, 0, 1, 1], [], []>} : vector<256x4xbf16>, vector<4x8xbf16>, vector<256x8xf32> -> vector<256x8xf32>
    %c0_59 = arith.constant 0 : index
    %c0_60 = arith.constant 0 : index
    %125 = vector.load %arg9[%c0_59, %c0_60] : memref<1x8xf32, #tpu.memory_space<vmem>>, vector<1x8xf32>
    %126 = vector.broadcast %125 : vector<1x8xf32> to vector<256x8xf32>
    %127 = arith.mulf %124, %126 : vector<256x8xf32>
    %c0_61 = arith.constant 0 : index
    %c0_62 = arith.constant 0 : index
    %128 = vector.load %arg10[%c0_61, %c0_62] : memref<1x8xf32, #tpu.memory_space<vmem>>, vector<1x8xf32>
    %129 = vector.broadcast %128 : vector<1x8xf32> to vector<256x8xf32>
    %130 = arith.addf %127, %129 : vector<256x8xf32>
    %cst_63 = arith.constant 0.000000e+00 : f32
    %131 = vector.broadcast %cst_63 : f32 to vector<256x8xf32>
    %132 = arith.maximumf %130, %131 : vector<256x8xf32>
    %c0_64 = arith.constant 0 : index
    %c0_65 = arith.constant 0 : index
    %133 = vector.load %arg11[%c0_64, %c0_65] : memref<4x8xbf16, #tpu.memory_space<vmem>>, vector<4x8xbf16>
    %cst_66 = arith.constant dense<0.000000e+00> : vector<256x8xf32>
    %134 = tpu.matmul %1, %133, %cst_66 {dimension_numbers = #tpu.dot_dimension_numbers<[1], [0], [0], [1], [0, 0, 1, 1], [], []>} : vector<256x4xbf16>, vector<4x8xbf16>, vector<256x8xf32> -> vector<256x8xf32>
    %c0_67 = arith.constant 0 : index
    %c0_68 = arith.constant 0 : index
    %135 = vector.load %arg12[%c0_67, %c0_68] : memref<1x8xf32, #tpu.memory_space<vmem>>, vector<1x8xf32>
    %136 = vector.broadcast %135 : vector<1x8xf32> to vector<256x8xf32>
    %137 = arith.addf %134, %136 : vector<256x8xf32>
    %138 = arith.addf %132, %137 : vector<256x8xf32>
    %c0_69 = arith.constant 0 : index
    %c0_70 = arith.constant 0 : index
    %c0_71 = arith.constant 0 : index
    %139 = vector.load %arg13[%c0_69, %c0_70, %c0_71] : memref<1x256x8xf32, #tpu.memory_space<vmem>>, vector<1x256x8xf32>
    %140 = vector.shape_cast %139 : vector<1x256x8xf32> to vector<256x8xf32>
    %141 = vector.shape_cast %138 : vector<256x8xf32> to vector<1x256x8xf32>
    tpu.vector_store %arg13[%c0_69, %c0_70, %c0_71], %141 {strides = array<i32>} : memref<1x256x8xf32, #tpu.memory_space<vmem>>, vector<1x256x8xf32>,
    return
  }
  func.func @transform_0(%arg0: i32) -> (i32, i32, i32) {
    %c0_i32 = arith.constant 0 : i32
    %c0_i32_0 = arith.constant 0 : i32
    %c0_i32_1 = arith.constant 0 : i32
    return %arg0, %c0_i32, %c0_i32_0 : i32, i32, i32
  }
  func.func @transform_1(%arg0: i32) -> (i32, i32) {
    %c0_i32 = arith.constant 0 : i32
    %c0_i32_0 = arith.constant 0 : i32
    %c0_i32_1 = arith.constant 0 : i32
    return %c0_i32, %c0_i32_0 : i32, i32
  }
  func.func @transform_2(%arg0: i32) -> (i32, i32) {
    %c0_i32 = arith.constant 0 : i32
    %c0_i32_0 = arith.constant 0 : i32
    %c0_i32_1 = arith.constant 0 : i32
    return %c0_i32, %c0_i32_0 : i32, i32
  }
  func.func @transform_3(%arg0: i32) -> (i32, i32) {
    %c0_i32 = arith.constant 0 : i32
    %c0_i32_0 = arith.constant 0 : i32
    %c0_i32_1 = arith.constant 0 : i32
    return %c0_i32, %c0_i32_0 : i32, i32
  }
  func.func @transform_4(%arg0: i32) -> (i32, i32, i32) {
    %c0_i32 = arith.constant 0 : i32
    %c0_i32_0 = arith.constant 0 : i32
    %c0_i32_1 = arith.constant 0 : i32
    %c0_i32_2 = arith.constant 0 : i32
    return %c0_i32, %c0_i32_0, %c0_i32_1 : i32, i32, i32
  }
  func.func @transform_5(%arg0: i32) -> (i32, i32) {
    %c0_i32 = arith.constant 0 : i32
    %c0_i32_0 = arith.constant 0 : i32
    %c0_i32_1 = arith.constant 0 : i32
    return %c0_i32, %c0_i32_0 : i32, i32
  }
  func.func @transform_6(%arg0: i32) -> (i32, i32) {
    %c0_i32 = arith.constant 0 : i32
    %c0_i32_0 = arith.constant 0 : i32
    %c0_i32_1 = arith.constant 0 : i32
    return %c0_i32, %c0_i32_0 : i32, i32
  }
  func.func @transform_7(%arg0: i32) -> (i32, i32) {
    %c0_i32 = arith.constant 0 : i32
    %c0_i32_0 = arith.constant 0 : i32
    %c0_i32_1 = arith.constant 0 : i32
    return %c0_i32, %c0_i32_0 : i32, i32
  }
  func.func @transform_8(%arg0: i32) -> (i32, i32) {
    %c0_i32 = arith.constant 0 : i32
    %c0_i32_0 = arith.constant 0 : i32
    %c0_i32_1 = arith.constant 0 : i32
    return %c0_i32, %c0_i32_0 : i32, i32
  }
  func.func @transform_9(%arg0: i32) -> (i32, i32) {
    %c0_i32 = arith.constant 0 : i32
    %c0_i32_0 = arith.constant 0 : i32
    %c0_i32_1 = arith.constant 0 : i32
    return %c0_i32, %c0_i32_0 : i32, i32
  }
  func.func @transform_10(%arg0: i32) -> (i32, i32) {
    %c0_i32 = arith.constant 0 : i32
    %c0_i32_0 = arith.constant 0 : i32
    %c0_i32_1 = arith.constant 0 : i32
    return %c0_i32, %c0_i32_0 : i32, i32
  }
  func.func @transform_11(%arg0: i32) -> (i32, i32) {
    %c0_i32 = arith.constant 0 : i32
    %c0_i32_0 = arith.constant 0 : i32
    %c0_i32_1 = arith.constant 0 : i32
    return %c0_i32, %c0_i32_0 : i32, i32
  }
  func.func @transform_12(%arg0: i32) -> (i32, i32, i32) {
    %c0_i32 = arith.constant 0 : i32
    %c0_i32_0 = arith.constant 0 : i32
    %c0_i32_1 = arith.constant 0 : i32
    return %arg0, %c0_i32, %c0_i32_0 : i32, i32, i32
  }
}

</mosaic_0001>

<bundles_post_ra>
// kernel: tpu_custom_call.1
= control target key start
LH: loop header
LB: loop body
LE: loop exit
PB: predicated region body
PF: predicated region fallthrough
CT: control target
= control target key end

     0   :  { %s6060_s21 = smov 0   ;;  %s7526_s0 = inlined_call_operand.vmem [shape: bf16[2,256,4], index: 0, kind: input, shape index: {}]   ;;  %s7527_s1 = inlined_call_operand.vmem [shape: bf16[4,4], index: 1, kind: input, shape index: {}]   ;;  %s7528_s2 = inlined_call_operand.vmem [shape: f32[1,4], index: 2, kind: input, shape index: {}]   ;;  %s7529_s3 = inlined_call_operand.vmem [shape: f32[1,4], index: 3, kind: input, shape index: {}]   ;;  %s7530_s4 = inlined_call_operand.vmem [shape: bf16[9,4,4], index: 4, kind: input, shape index: {}]   ;;  %s7531_s5 = inlined_call_operand.vmem [shape: f32[1,4], index: 5, kind: input, shape index: {}]   ;;  %s7532_s6 = inlined_call_operand.vmem [shape: f32[1,4], index: 6, kind: input, shape index: {}]   ;;  %s7533_s7 = inlined_call_operand.vmem [shape: bf16[4,8], index: 7, kind: input, shape index: {}]   ;;  %s7534_s8 = inlined_call_operand.vmem [shape: f32[1,8], index: 8, kind: input, shape index: {}]   ;;  %s7535_s9 = inlined_call_operand.vmem [shape: f32[1,8], index: 9, kind: input, shape index: {}]   ;;  %s7536_s10 = inlined_call_operand.vmem [shape: bf16[4,8], index: 10, kind: input, shape index: {}]   ;;  %s7537_s11 = inlined_call_operand.vmem [shape: f32[1,8], index: 11, kind: input, shape index: {}]   ;;  %s7538_s12 = inlined_call_operand.vmem [shape: f32[2,256,8], index: 12, kind: output, shape index: {}]  }
   0x1 LB: > { %s4763_s22 = sadd.s32 4294967295, %s5990_s21   ;;  %p4767_p0 = scmp.ge.s32.totalorder %s5990_s21, 1  ;;  %s5990_s21 = sphi %s6060_s21, %s22_s21  }
   0x2   : > { %p362_p1 = scmp.lt.s32.totalorder %s5990_s21, 3 }
   0x4   : > { %p363_p2 = pnand %p4767_p0, %p362_p1 }
   0x6   : > { %366 = sbr.rel (%p363_p2) target bundleno = 1154 (0x482), region = 68 }
   0xd   : > { %v447_v0 = vld [vmem:[%s7527_s1] sm:$0x3]  ;;  %vm577_vm0 = vcmask 1041408   ;;  %p404_p3 = scmp.lt.s32.totalorder %s4763_s22, 1  ;;  %vm528_vm1 = vcmask 31744   ;;  %v7539_v20 = vmov 0.0|0.0   ;;  %v900_v25 = vlaneseq }
   0xe   : > { %5929 = vmatprep.subr.msk.bf16.mxu0 %vm577_vm0, %v447_v0  ;;  %v579_v1 = vsel %vm577_vm0, %v447_v0, 0  ;;  %v4870_v18 = vld [vmem:[%s7530_s4 + $0x2] sm:$0x3]  ;;  %v4919_v21 = vld [vmem:[%s7530_s4 + $0x6] sm:$0x3]  ;;  %v7540_v63 = vmov 0  }
   0xf   : > { %5266 = vmatpush3.bf16.msra.mxu0 %v579_v1  ;;  %s7609_s22 = smov (!%p404_p3, %s4763_s22), 1  ;;  %v1850_v19 = vsel %vm577_vm0, %v4870_v18, 0  ;;  %5933 = vmatprep.subr.msk.bf16.mxu1 %vm577_vm0, %v4919_v21  ;;  %v2796_v22 = vsel %vm577_vm0, %v4919_v21, 0  ;;  %v6127_v23 = vld [vmem:[%s7530_s4 + $0x8] sm:$0x3]  ;;  %v6138_v26 = vshrl.u32 %v900_v25, 7 }
  0x10   : > { %s5059_s25 = sshll.u32 %s7609_s22, 7  ;;  %5930 = vmatprep.subr.msk.bf16.mxu0 %vm577_vm0, %v4870_v18  ;;  %5402 = vmatpush3.bf16.msra.mxu1 %v2796_v22  ;;  %v6134_v24 = vld [vmem:[%s7530_s4] sm:$0x3]  ;;  %v2016_v0 = vrot.slane %v7540_v63, 3  ;;  %v2019_v1 = vrot.slane %v7540_v63, 4  ;;  %s5060_s16 = sshll.u32 %s7609_s22, 8 }
  0x11   : > { %s6079_s28 = scalar_lea.vmem %s7526_s0, %s5059_s25  ;;  %5934 = vmatprep.subr.msk.bf16.mxu1 %vm577_vm0, %v6127_v23  ;;  %v904_v27 = vadd.s32 48, %v6138_v26  ;;  %v902_v28 = vadd.s32 32, %v6138_v26  ;;  %v905_v29 = vadd.s32 56, %v6138_v26  ;;  %v903_v31 = vadd.s32 40, %v6138_v26  ;;  %s7348_s19 = scalar_lea.vmem %s7538_s12, %s5060_s16 }
  0x12   : > { %v5952_v2 = vld [vmem:[%s6079_s28] sm:$0xff]   ;;  %v5953_v3 = vld [vmem:[%s6079_s28 + $0x8] sm:$0xff]   ;;  %v5954_v4 = vld [vmem:[%s6079_s28 + $0x10] sm:$0xff]   ;;  %v908_v32 = vadd.s32 80, %v6138_v26  ;;  %v906_v33 = vadd.s32 64, %v6138_v26  ;;  %v909_v34 = vadd.s32 88, %v6138_v26 }
  0x13   : > { %5267 = vmatprep.mubr.msk.bf16.mxu0 %vm528_vm1, %v5952_v2  ;;  %v5955_v5 = vld [vmem:[%s6079_s28 + $0x18] sm:$0xff]   ;;  %v5956_v6 = vld [vmem:[%s6079_s28 + $0x20] sm:$0xff]   ;;  %v5957_v7 = vld [vmem:[%s6079_s28 + $0x28] sm:$0xff]   ;;  %v952_v30 = vand.u32 15, %v904_v27  ;;  %v907_v35 = vadd.s32 72, %v6138_v26  ;;  %v938_v36 = vand.u32 15, %v902_v28 }
  0x14   : > { %5268 = vmatmul.mubr.msk.bf16.vlgmr.msra.gmra.mrb[0].mxu0 %vm528_vm1, %v5953_v3  ;;  %v5958_v8 = vld [vmem:[%s6079_s28 + $0x30] sm:$0xff]   ;;  %v5959_v9 = vld [vmem:[%s6079_s28 + $0x38] sm:$0xff]   ;;  %v5960_v10 = vld [vmem:[%s6079_s28 + $0x40] sm:$0xff]   ;;  %v959_v37 = vand.u32 15, %v905_v29  ;;  %v912_v38 = vadd.s32 112, %v6138_v26  ;;  %v945_v40 = vand.u32 15, %v903_v31 }
  0x15   : > { %5271 = vmatprep.mubr.msk.bf16.mxu0 %vm528_vm1, %v5954_v4  ;;  %v5961_v11 = vld [vmem:[%s6079_s28 + $0x48] sm:$0xff]   ;;  %v5962_v12 = vld [vmem:[%s6079_s28 + $0x50] sm:$0xff]   ;;  %v5963_v13 = vld [vmem:[%s6079_s28 + $0x58] sm:$0xff]   ;;  %5300 = vmatpush3.bf16.msra.mxu0 %v1850_v19  ;;  %v6149_v39 = vadd.s32 4294967295, %v952_v30  ;;  %v980_v41 = vand.u32 15, %v908_v32  ;;  %v966_v42 = vand.u32 15, %v906_v33 }
  0x16   : > { %v5964_v14 = vld [vmem:[%s6079_s28 + $0x60] sm:$0xff]   ;;  %v5965_v15 = vld [vmem:[%s6079_s28 + $0x68] sm:$0xff]   ;;  %v5966_v16 = vld [vmem:[%s6079_s28 + $0x70] sm:$0xff]   ;;  %5931 = vmatprep.subr.msk.bf16.mxu0 %vm577_vm0, %v6134_v24  ;;  %v987_v43 = vand.u32 15, %v909_v34  ;;  %v973_v44 = vand.u32 15, %v907_v35  ;;  %v910_v45 = vadd.s32 96, %v6138_v26 }
  0x17   : > { %v5967_v17 = vld [vmem:[%s6079_s28 + $0x78] sm:$0xff]   ;;  %v913_v46 = vadd.s32 120, %v6138_v26  ;;  %v6153_v47 = vadd.s32 4294967295, %v938_v36  ;;  %v6155_v48 = vadd.s32 1, %v959_v37  ;;  %v911_v49 = vadd.s32 104, %v6138_v26 }
  0x18   : > { %v1008_v50 = vand.u32 15, %v912_v38  ;;  %v916_v51 = vadd.s32 144, %v6138_v26  ;;  %v914_v52 = vadd.s32 128, %v6138_v26  ;;  %v6160_v53 = vadd.s32 1, %v945_v40  ;;  %v6212_v38 = vld [vmem:[%s7528_s2] ss:$0 sm:$0xff] }
  0x19   : > { %v6162_v54 = vadd.s32 4294967295, %v980_v41  ;;  %v6164_v55 = vadd.s32 4294967295, %v966_v42  ;;  %v917_v56 = vadd.s32 152, %v6138_v26  ;;  %v6167_v57 = vadd.s32 1, %v987_v43  ;;  %v6221_v43 = vld [vmem:[%s7529_s3] ss:$0 sm:$0xff] }
  0x1a   : > { %v6169_v58 = vadd.s32 1, %v973_v44  ;;  %v994_v59 = vand.u32 15, %v910_v45  ;;  %v1015_v60 = vand.u32 15, %v913_v46  ;;  %v1001_v61 = vand.u32 15, %v911_v49 }
  0x1b   : > { %v915_v62 = vadd.s32 136, %v6138_v26  ;;  %v6174_v2 = vadd.s32 4294967295, %v1008_v50  ;;  %v1036_v3 = vand.u32 15, %v916_v51  ;;  %v1022_v4 = vand.u32 15, %v914_v52 }
  0x1c   : > { %5272 = vmatmul.mubr.msk.bf16.gmra.mrb[4].mxu0 %vm528_vm1, %v5955_v5  ;;  %v920_v5 = vadd.s32 176, %v6138_v26  ;;  %v923_v22 = vadd.s32 200, %v6138_v26  ;;  %vm1576_vm2 = vcmp.ge.s32.totalorder %v6149_v39, 0  ;;  %v6201_v30 = vsel %vm577_vm0, %v6127_v23, 0 }
  0x1d   : > { %5275 = vmatprep.mubr.msk.bf16.mxu0 %vm528_vm1, %v5956_v6  ;;  %v1043_v6 = vand.u32 15, %v917_v56  ;;  %v6191_v18 = vadd.s32 4294967295, %v1036_v3  ;;  %v6193_v19 = vadd.s32 4294967295, %v1022_v4  ;;  %v928_v33 = vadd.s32 240, %v6138_v26 }
  0x1e   : > { %v1064_v21 = vand.u32 15, %v920_v5  ;;  %vm1574_vm3 = vcmp.ge.s32.totalorder %v6153_v47, 0  ;;  %v926_v36 = vadd.s32 224, %v6138_v26  ;;  %v929_v37 = vadd.s32 248, %v6138_v26 }
  0x1f   : > { %v6196_v25 = vadd.s32 1, %v1043_v6  ;;  %v1085_v40 = vand.u32 15, %v923_v22  ;;  %v927_v41 = vadd.s32 232, %v6138_v26  ;;  %v932_v42 = vadd.s32 272, %v6138_v26 }
  0x20   : > { %v6214_v23 = vadd.s32 4294967295, %v1064_v21  ;;  %vm1383_vm4 = vcmp.lt.s32.totalorder %v6160_v53, 16  ;;  %v930_v49 = vadd.s32 256, %v6138_v26  ;;  %vm1385_vm5 = vcmp.lt.s32.totalorder %v6155_v48, 16 }
  0x21   : > { %v1120_v56 = vand.u32 15, %v928_v33  ;;  %v6241_v5 = vadd.s32 1, %v1085_v40  ;;  %v1113_v6 = vand.u32 15, %v927_v41  ;;  %vm1580_vm6 = vcmp.ge.s32.totalorder %v6162_v54, 0 }
  0x22   : > { %vm1578_vm7 = vcmp.ge.s32.totalorder %v6164_v55, 0  ;;  %vm1387_vm8 = vcmp.lt.s32.totalorder %v6169_v58, 16  ;;  %vm1389_vm9 = vcmp.lt.s32.totalorder %v6167_v57, 16  ;;  %vm1584_vm10 = vcmp.ge.s32.totalorder %v6174_v2, 0 }
  0x23   : > { %v6249_v22 = vadd.s32 4294967295, %v1120_v56  ;;  %vm2013_vm13 = vsmask.f32 4352  ;;  %vm1588_vm15 = vcmp.ge.s32.totalorder %v6191_v18, 0 }
  0x24   : > { %5276 = vmatmul.mubr.msk.bf16.gmra.mrb[8].mxu0 %vm528_vm1, %v5957_v7  ;;  %v918_v7 = vadd.s32 160, %v6138_v26 }
  0x25   : > { %5279 = vmatprep.mubr.msk.bf16.mxu0 %vm528_vm1, %v5958_v8  ;;  %v921_v8 = vadd.s32 184, %v6138_v26 }
  0x26   : > { %v1050_v27 = vand.u32 15, %v918_v7  ;;  %v1148_v7 = vand.u32 15, %v932_v42 }
  0x27   : > { %v1071_v28 = vand.u32 15, %v921_v8 }
  0x28   : > { %v6224_v44 = vadd.s32 4294967295, %v1050_v27 }
  0x29   : > { %v6226_v45 = vadd.s32 1, %v1071_v28 }
  0x2c   : > { %5280 = vmatmul.mubr.msk.bf16.gmra.mrb[12].mxu0 %vm528_vm1, %v5959_v9  ;;  %v919_v9 = vadd.s32 168, %v6138_v26 }
  0x2d   : > { %5283 = vmatprep.mubr.msk.bf16.mxu0 %vm528_vm1, %v5960_v10  ;;  %v6180_v10 = vadd.s32 4294967295, %v994_v59  ;;  %v933_v59 = vadd.s32 280, %v6138_v26 }
  0x2e   : > { %v1057_v29 = vand.u32 15, %v919_v9 }
  0x2f   : > { %v1155_v27 = vand.u32 15, %v933_v59  ;;  %vm1582_vm11 = vcmp.ge.s32.totalorder %v6180_v10, 0 }
  0x30   : > { %v6228_v46 = vadd.s32 1, %v1057_v29 }
  0x31   : > { %v6269_v59 = vadd.s32 1, %v1155_v27 }
  0x34   : > { %5284 = vmatmul.mubr.msk.bf16.gmra.mrb[16].mxu0 %vm528_vm1, %v5961_v11  ;;  %v6182_v11 = vadd.s32 1, %v1015_v60 }
  0x35   : > { %5287 = vmatprep.mubr.msk.bf16.mxu0 %vm528_vm1, %v5962_v12  ;;  %v924_v12 = vadd.s32 208, %v6138_v26 }
  0x36   : > { %vm1393_vm14 = vcmp.lt.s32.totalorder %v6182_v11, 16 }
  0x37   : > { %v1092_v31 = vand.u32 15, %v924_v12 }
  0x39   : > { %v6232_v51 = vadd.s32 4294967295, %v1092_v31 }
  0x3c   : > { %5288 = vmatmul.mubr.msk.bf16.gmra.mrb[20].mxu0 %vm528_vm1, %v5963_v13  ;;  %v922_v13 = vadd.s32 192, %v6138_v26 }
  0x3d   : > { %5291 = vmatprep.mubr.msk.bf16.mxu0 %vm528_vm1, %v5964_v14  ;;  %v6186_v14 = vadd.s32 1, %v1001_v61 }
  0x3e   : > { %v1078_v32 = vand.u32 15, %v922_v13  ;;  %v1134_v13 = vand.u32 15, %v930_v49 }
  0x3f   : > { %vm1391_vm12 = vcmp.lt.s32.totalorder %v6186_v14, 16 }
  0x40   : > { %v6234_v52 = vadd.s32 4294967295, %v1078_v32  ;;  %v6264_v41 = vadd.s32 4294967295, %v1134_v13 }
  0x44   : > { %5292 = vmatmul.mubr.msk.bf16.gmra.mrb[24].mxu0 %vm528_vm1, %v5965_v15  ;;  %v1029_v15 = vand.u32 15, %v915_v62 }
  0x45   : > { %5295 = vmatprep.mubr.msk.bf16.mxu0 %vm528_vm1, %v5966_v16  ;;  %v925_v16 = vadd.s32 216, %v6138_v26 }
  0x46   : > { %v6205_v34 = vadd.s32 1, %v1029_v15  ;;  %v931_v15 = vadd.s32 264, %v6138_v26 }
  0x47   : > { %v1099_v35 = vand.u32 15, %v925_v16 }
  0x48   : > { %v1141_v42 = vand.u32 15, %v931_v15 }
  0x49   : > { %v6238_v62 = vadd.s32 1, %v1099_v35  ;;  %v6258_v35 = vadd.s32 1, %v1113_v6 }
  0x4c   : > { %5296 = vmatmul.mubr.msk.bf16.gmra.mrb[28].mxu0 %vm528_vm1, %v5967_v17  ;;  %v6189_v17 = vor.u32 %v2019_v1, %v2016_v0  ;;  %v1106_v0 = vand.u32 15, %v926_v36  ;;  %v1127_v1 = vand.u32 15, %v929_v37  ;;  %v6260_v36 = vadd.s32 4294967295, %v1148_v7 }
  0x4d   : > { %5301 = vmatprep.mubr.bf16.mxu0 %v7539_v20 }
  0x4e   : > { %v6253_v31 = vadd.s32 4294967295, %v1106_v0  ;;  %v6255_v32 = vadd.s32 1, %v1127_v1 }
  0xe7   : > { %v5269_v50 = vpop.f32.mrb[0].mxu0 }
  0xe8   : > { %v751_v60 = vmul.f32 %v5269_v50, %v6212_v38  ;;  %v615_v61 = vpop.f32.mrb[1].mxu0 }
  0xe9   : > { %v749_v3 = vmul.f32 %v6212_v38, %v615_v61  ;;  %v5270_v4 = vpop.f32.mrb[2].mxu0  ;;  %v7541_v61 = vmov 0.0  }
  0xea   : > { %v790_v8 = vadd.f32 %v6221_v43, %v751_v60  ;;  %v752_v9 = vmul.f32 %v5270_v4, %v6212_v38  ;;  %v618_v12 = vpop.f32.mrb[3].mxu0  ;;  %v2214_v60 = vsel %vm577_vm0, %v6134_v24, 0 }
  0xeb   : > { %v788_v16 = vadd.f32 %v6221_v43, %v749_v3  ;;  %v750_v21 = vmul.f32 %v6212_v38, %v618_v12 }
  0xec   : > { %v822_v28 = vmax.f32 %v790_v8, 0.0  ;;  %v791_v29 = vadd.f32 %v6221_v43, %v752_v9 }
  0xed   : > { %v820_v33 = vmax.f32 %v788_v16, 0.0  ;;  %v789_v26 = vadd.f32 %v6221_v43, %v750_v21  ;;  %v6290_v16 = vadd.s32 1, %v1141_v42 }
  0xee   : > { %v1736_v37 = vsel %vm1576_vm2, %v822_v28, 0.0  ;;  %v823_v40 = vmax.f32 %v791_v29, 0.0  ;;  %vm1586_vm2 = vcmp.ge.s32.totalorder %v6193_v19, 0 }
  0xef   : > { %v1734_v49 = vsel %vm1574_vm3, %v820_v33, 0.0  ;;  %v821_v50 = vmax.f32 %v789_v26, 0.0  ;;  %v5273_v56 = vpop.f32.mrb[4].mxu0  ;;  %v1767_v39 = vpack.c.bf16 %v820_v33, %v7541_v61  ;;  %vm1395_vm3 = vcmp.lt.s32.totalorder %v6205_v34, 16 }
  0xf0   : > { %v6274_v0 = vpack.c.bf16 %v823_v40, %v1736_v37  ;;  %v755_v1 = vmul.f32 %v5273_v56, %v6212_v38  ;;  %v631_v3 = vpop.f32.mrb[5].mxu0  ;;  %v6277_v4 = vpack.c.bf16 %v823_v40, %v822_v28  ;;  %v1513_v9 = vsel %vm1385_vm5, %v823_v40, 0.0  ;;  %v6305_v37 = vld [vmem:[%s7530_s4 + $0x4] sm:$0x3] }
  0xf1   : > { %v1511_v47 = vsel %vm1383_vm4, %v821_v50, 0.0  ;;  %v6281_v6 = vpack.c.bf16 %v821_v50, %v820_v33  ;;  %v6283_v7 = vpack.c.bf16 %v821_v50, %v1734_v49  ;;  %v753_v8 = vmul.f32 %v6212_v38, %v631_v3  ;;  %v5274_v24 = vpop.f32.mrb[6].mxu0 }
  0xf2   : > { %v1768_v12 = vpack.c.bf16 %v822_v28, %v1511_v47  ;;  %v794_v13 = vadd.f32 %v6221_v43, %v755_v1  ;;  %v634_v15 = vpop.f32.mrb[7].mxu0  ;;  %v2407_v53 = vshll.u32 %v6274_v0, 16  ;;  %v756_v27 = vmul.f32 %v5274_v24, %v6212_v38 }
  0xf3   : > { %v792_v21 = vadd.f32 %v6221_v43, %v753_v8  ;;  %v754_v29 = vmul.f32 %v6212_v38, %v634_v15  ;;  %5302 = vmatmul.mubr.msk.bf16.vlgmr.msra.gmra.mrb[32].mxu0 %vm528_vm1, %v6281_v6  ;;  %v2022_v33 = vshrl.u32 %v1767_v39, 16  ;;  %v2025_v26 = vshll.u32 %v1767_v39, 16 }
  0xf4   : > { %v826_v28 = vmax.f32 %v794_v13, 0.0  ;;  %5305 = vmatprep.mubr.msk.bf16.mxu0 %vm528_vm1, %v6277_v4  ;;  %5334 = vmatpush3.bf16.msra.mxu0 %v2214_v60  ;;  %v795_v42 = vadd.f32 %v6221_v43, %v756_v27  ;;  %v2031_v50 = vshrl.u32 %v1768_v12, 16  ;;  %v2034_v1 = vshll.u32 %v1768_v12, 16 }
  0xf5   : > { %v824_v40 = vmax.f32 %v792_v21, 0.0  ;;  %v793_v49 = vadd.f32 %v6221_v43, %v754_v29  ;;  %5932 = vmatprep.subr.msk.bf16.mxu0 %vm577_vm0, %v6305_v37  ;;  %v2024_v60 = vrot.slane %v2022_v33, 3  ;;  %v2027_v39 = vrot.slane %v2025_v26, 4 }
  0xf6   : > { %v1740_v56 = vsel %vm1580_vm6, %v826_v28, 0.0  ;;  %v827_v8 = vmax.f32 %v795_v42, 0.0  ;;  %v6318_v15 = vrot.slane %v2407_v53, 1  ;;  %v2033_v29 = vrot.slane %v2031_v50, 3 }
  0xf7   : > { %v1738_v3 = vsel %vm1578_vm7, %v824_v40, 0.0  ;;  %v1769_v47 = vpack.c.bf16 %v824_v40, %v1513_v9  ;;  %v825_v24 = vmax.f32 %v793_v49, 0.0  ;;  %v5277_v13 = vpop.f32.mrb[8].mxu0  ;;  %v2036_v20 = vrot.slane %v2034_v1, 4 }
  0xf8   : > { %v759_v21 = vmul.f32 %v5277_v13, %v6212_v38  ;;  %v647_v27 = vpop.f32.mrb[9].mxu0  ;;  %v6322_v12 = vpack.c.bf16 %v827_v8, %v1740_v56  ;;  %v6334_v56 = vor.u32 %v2027_v39, %v2024_v60  ;;  %v1517_v58 = vsel %vm1389_vm9, %v827_v8, 0.0 }
  0xf9   : > { %v2040_v33 = vshrl.u32 %v1769_v47, 16  ;;  %v2043_v26 = vshll.u32 %v1769_v47, 16  ;;  %v5278_v55 = vpop.f32.mrb[10].mxu0  ;;  %v1515_v9 = vsel %vm1387_vm8, %v825_v24, 0.0  ;;  %v6326_v42 = vpack.c.bf16 %v825_v24, %v1738_v3 }
  0xfa   : > { %v798_v53 = vadd.f32 %v6221_v43, %v759_v21  ;;  %v757_v49 = vmul.f32 %v6212_v38, %v647_v27  ;;  %v650_v63 = vpop.f32.mrb[11].mxu0  ;;  %v6330_v48 = vpack.c.bf16 %v826_v28, %v1515_v9  ;;  %v760_v50 = vmul.f32 %v5278_v55, %v6212_v38 }
  0xfb   : > { %v758_v47 = vmul.f32 %v6212_v38, %v650_v63  ;;  %v6340_v13 = vpack.c.bf16 %v825_v24, %v824_v40  ;;  %v2037_v9 = vor.u32 %v2036_v20, %v2033_v29  ;;  %v6344_v55 = vpack.c.bf16 %v827_v8, %v826_v28  ;;  %v6385_v40 = vld [vmem:[%s7530_s4 + $0xa] sm:$0x3] }
  0xfc   : > { %v830_v1 = vmax.f32 %v798_v53, 0.0  ;;  %v796_v3 = vadd.f32 %v6221_v43, %v757_v49  ;;  %v799_v21 = vadd.f32 %v6221_v43, %v760_v50  ;;  %v2042_v57 = vrot.slane %v2040_v33, 3 }
  0xfd   : > { %7566 = vst [vmem:[#allocation2_spill] sm:$0xff] %v6340_v13  ;;  %v797_v27 = vadd.f32 %v6221_v43, %v758_v47  ;;  %7567 = vst [vmem:[#allocation3_spill] sm:$0xff] %v6344_v55  ;;  %5306 = vmatmul.mubr.msk.bf16.gmra.mrb[36].mxu0 %vm528_vm1, %v6340_v13  ;;  %v2045_v39 = vrot.slane %v2043_v26, 4  ;;  %v6354_v20 = vsel %vm2013_vm13, %v6334_v56, %v2037_v9  ;;  %vm1397_vm4 = vcmp.lt.s32.totalorder %v6196_v25, 16 }
  0xfe   : > { %v1744_v63 = vsel %vm1584_vm10, %v830_v1, 0.0  ;;  %v828_v60 = vmax.f32 %v796_v3, 0.0  ;;  %v831_v24 = vmax.f32 %v799_v21, 0.0  ;;  %5309 = vmatprep.mubr.msk.bf16.mxu0 %vm528_vm1, %v6344_v55  ;;  %5403 = vmatprep.mubr.msk.bf16.mxu1 %vm528_vm1, %v6354_v20  ;;  %v2049_v10 = vshrl.u32 %v6330_v48, 16 }
  0xff   : > { %v829_v53 = vmax.f32 %v797_v27, 0.0  ;;  %v5281_v2 = vpop.f32.mrb[12].mxu0  ;;  %v2046_v26 = vor.u32 %v2045_v39, %v2042_v57  ;;  %vm1592_vm5 = vcmp.ge.s32.totalorder %v6214_v23, 0  ;;  %vm1590_vm6 = vcmp.ge.s32.totalorder %v6224_v44, 0 }
 0x100   : > { %v1742_v28 = vsel %vm1582_vm11, %v828_v60, 0.0  ;;  %v1771_v8 = vpack.c.bf16 %v828_v60, %v1517_v58  ;;  %v763_v29 = vmul.f32 %v5281_v2, %v6212_v38  ;;  %v663_v33 = vpop.f32.mrb[13].mxu0  ;;  %v6365_v49 = vpack.c.bf16 %v831_v24, %v1744_v63 }
 0x101   : > { %v1519_v50 = vsel %vm1391_vm12, %v829_v53, 0.0  ;;  %v6369_v47 = vpack.c.bf16 %v829_v53, %v1742_v28  ;;  %v5282_v3 = vpop.f32.mrb[14].mxu0  ;;  %v1521_v21 = vsel %vm1393_vm14, %v831_v24, 0.0  ;;  %v761_v14 = vmul.f32 %v6212_v38, %v663_v33 }
 0x102   : > { %v6375_v27 = vpack.c.bf16 %v830_v1, %v1519_v50  ;;  %v802_v57 = vadd.f32 %v6221_v43, %v763_v29  ;;  %v666_v39 = vpop.f32.mrb[15].mxu0  ;;  %v2058_v63 = vshrl.u32 %v1771_v8, 16  ;;  %v2061_v2 = vshll.u32 %v1771_v8, 16 }
 0x103   : > { %v6380_v28 = vsel %vm2013_vm13, %v2037_v9, %v2046_v26  ;;  %v764_v11 = vmul.f32 %v5282_v3, %v6212_v38  ;;  %v762_v29 = vmul.f32 %v6212_v38, %v666_v39  ;;  %v6393_v8 = vpack.c.bf16 %v829_v53, %v828_v60 }
 0x104   : > { %v6387_v58 = vmax.f32 %v802_v57, 0.0  ;;  %5404 = vmatmul.mubr.msk.bf16.vlgmr.msra.gmra.mrb[0].mxu1 %vm528_vm1, %v6380_v28  ;;  %v800_v33 = vadd.f32 %v6221_v43, %v761_v14  ;;  %v2051_v9 = vrot.slane %v2049_v10, 3  ;;  %v2052_v50 = vshll.u32 %v6330_v48, 16 }
 0x105   : > { %7568 = vst [vmem:[#allocation4_spill] sm:$0xff] %v6393_v8  ;;  %5436 = vmatpush3.bf16.msra.mxu1 %v6201_v30  ;;  %v6398_v54 = vpack.c.bf16 %v831_v24, %v830_v1  ;;  %v803_v53 = vadd.f32 %v6221_v43, %v764_v11  ;;  %v801_v3 = vadd.f32 %v6221_v43, %v762_v29  ;;  %v2060_v24 = vrot.slane %v2058_v63, 3 }
 0x106   : > { %v1748_v60 = vsel %vm1588_vm15, %v6387_v58, 0.0  ;;  %5310 = vmatmul.mubr.msk.bf16.gmra.mrb[40].mxu0 %vm528_vm1, %v6393_v8  ;;  %5935 = vmatprep.subr.msk.bf16.mxu1 %vm577_vm0, %v6385_v40  ;;  %v832_v30 = vmax.f32 %v800_v33, 0.0  ;;  %v2054_v48 = vrot.slane %v2052_v50, 4  ;;  %v2063_v10 = vrot.slane %v2061_v2, 4 }
 0x107   : > { %7569 = vst [vmem:[#allocation5_spill] sm:$0xff] %v6398_v54  ;;  %5313 = vmatprep.mubr.msk.bf16.mxu0 %vm528_vm1, %v6398_v54  ;;  %v5285_v1 = vpop.f32.mrb[16].mxu0  ;;  %v835_v18 = vmax.f32 %v803_v53, 0.0  ;;  %v833_v39 = vmax.f32 %v801_v3, 0.0  ;;  %vm1399_vm7 = vcmp.lt.s32.totalorder %v6228_v46, 16  ;;  %v2067_v29 = vshrl.u32 %v6375_v27, 16 }
 0x108   : > { %v767_v14 = vmul.f32 %v5285_v1, %v6212_v38  ;;  %v679_v11 = vpop.f32.mrb[17].mxu0  ;;  %v1746_v57 = vsel %vm1586_vm2, %v832_v30, 0.0  ;;  %v1773_v33 = vpack.c.bf16 %v832_v30, %v1521_v21  ;;  %v2055_v50 = vor.u32 %v2054_v48, %v2051_v9 }
 0x109   : > { %v765_v61 = vmul.f32 %v6212_v38, %v679_v11  ;;  %v5286_v54 = vpop.f32.mrb[18].mxu0  ;;  %v6420_v8 = vpack.c.bf16 %v835_v18, %v1748_v60  ;;  %v1523_v63 = vsel %vm1395_vm3, %v833_v39, 0.0  ;;  %v6424_v2 = vpack.c.bf16 %v833_v39, %v1746_v57 }
 0x10a   : > { %vm1401_vm8 = vcmp.lt.s32.totalorder %v6226_v45, 16  ;;  %v682_v53 = vpop.f32.mrb[19].mxu0  ;;  %v2070_v3 = vshll.u32 %v6375_v27, 16  ;;  %v1525_v21 = vsel %vm1397_vm4, %v835_v18, 0.0  ;;  %v6432_v9 = vpack.c.bf16 %v6387_v58, %v1523_v63 }
 0x10b   : > { %v6435_v60 = vsel %vm2013_vm13, %v2046_v26, %v2055_v50  ;;  %v2076_v34 = vshrl.u32 %v1773_v33, 16  ;;  %v2079_v48 = vshll.u32 %v1773_v33, 16  ;;  %v806_v57 = vadd.f32 %v6221_v43, %v767_v14 }
 0x10c   : > { %5407 = vmatprep.mubr.msk.bf16.mxu1 %vm528_vm1, %v6435_v60  ;;  %v804_v27 = vadd.f32 %v6221_v43, %v765_v61  ;;  %v2064_v1 = vor.u32 %v2063_v10, %v2060_v24  ;;  %v768_v11 = vmul.f32 %v5286_v54, %v6212_v38  ;;  %v766_v25 = vmul.f32 %v6212_v38, %v682_v53 }
 0x10d   : > { %v6443_v19 = vpack.c.bf16 %v833_v39, %v832_v30  ;;  %vm1596_vm9 = vcmp.ge.s32.totalorder %v6232_v51, 0  ;;  %vm1594_vm10 = vcmp.ge.s32.totalorder %v6234_v52, 0  ;;  %v6447_v26 = vmax.f32 %v806_v57, 0.0 }
 0x10e   : > { %v836_v33 = vmax.f32 %v804_v27, 0.0  ;;  %v2069_v63 = vrot.slane %v2067_v29, 3  ;;  %v2072_v55 = vrot.slane %v2070_v3, 4  ;;  %v6450_v14 = vsel %vm2013_vm13, %v2055_v50, %v2064_v1 }
 0x10f   : > { %7570 = vst [vmem:[#allocation6_spill] sm:$0xff] %v6443_v19  ;;  %v807_v61 = vadd.f32 %v6221_v43, %v768_v11  ;;  %v805_v54 = vadd.f32 %v6221_v43, %v766_v25  ;;  %5314 = vmatmul.mubr.msk.bf16.gmra.mrb[44].mxu0 %vm528_vm1, %v6443_v19  ;;  %v6457_v30 = vpack.c.bf16 %v835_v18, %v6387_v58  ;;  %v5289_v24 = vpop.f32.mrb[20].mxu0  ;;  %v1752_v10 = vsel %vm1592_vm5, %v6447_v26, 0.0 }
 0x110   : > { %v1750_v39 = vsel %vm1590_vm6, %v836_v33, 0.0  ;;  %v6464_v29 = vpack.c.bf16 %v836_v33, %v1525_v21  ;;  %5408 = vmatmul.mubr.msk.bf16.gmra.mrb[4].mxu1 %vm528_vm1, %v6450_v14  ;;  %v2073_v50 = vor.u32 %v2072_v55, %v2069_v63  ;;  %v695_v53 = vpop.f32.mrb[21].mxu0  ;;  %vm1403_vm11 = vcmp.lt.s32.totalorder %v6241_v5, 16 }
 0x111   : > { %7571 = vst [vmem:[#allocation7_spill] sm:$0xff] %v6457_v30  ;;  %v839_v3 = vmax.f32 %v807_v61, 0.0  ;;  %v837_v58 = vmax.f32 %v805_v54, 0.0  ;;  %5317 = vmatprep.mubr.msk.bf16.mxu0 %vm528_vm1, %v6457_v30  ;;  %v771_v23 = vmul.f32 %v5289_v24, %v6212_v38  ;;  %v769_v18 = vmul.f32 %v6212_v38, %v695_v53  ;;  %v5290_v44 = vpop.f32.mrb[22].mxu0 }
 0x112   : > { %v6476_v27 = vsel %vm2013_vm13, %v2064_v1, %v2073_v50  ;;  %v2078_v55 = vrot.slane %v2076_v34, 3  ;;  %vm1405_vm12 = vcmp.lt.s32.totalorder %v6238_v62, 16  ;;  %v698_v11 = vpop.f32.mrb[23].mxu0  ;;  %v2094_v25 = vshrl.u32 %v6464_v29, 16 }
 0x113   : > { %v6480_v63 = vpack.c.bf16 %v839_v3, %v1752_v10  ;;  %v1527_v61 = vsel %vm1399_vm7, %v837_v58, 0.0  ;;  %v6484_v54 = vpack.c.bf16 %v837_v58, %v1750_v39  ;;  %5411 = vmatprep.mubr.msk.bf16.mxu1 %vm528_vm1, %v6476_v27  ;;  %v810_v34 = vadd.f32 %v6221_v43, %v771_v23 }
 0x114   : > { %v6489_v24 = vpack.c.bf16 %v6447_v26, %v1527_v61  ;;  %v808_v1 = vadd.f32 %v6221_v43, %v769_v18  ;;  %v2081_v53 = vrot.slane %v2079_v48, 4  ;;  %v2097_v21 = vshll.u32 %v6464_v29, 16 }
 0x115   : > { %v1529_v10 = vsel %vm1401_vm8, %v839_v3, 0.0  ;;  %v772_v46 = vmul.f32 %v5290_v44, %v6212_v38  ;;  %v770_v39 = vmul.f32 %v6212_v38, %v698_v11  ;;  %vm1600_vm14 = vcmp.ge.s32.totalorder %v6249_v22, 0 }
 0x116   : > { %v842_v57 = vmax.f32 %v810_v34, 0.0  ;;  %v840_v30 = vmax.f32 %v808_v1, 0.0  ;;  %v2082_v61 = vor.u32 %v2081_v53, %v2078_v55  ;;  %v6499_v19 = vpack.c.bf16 %v837_v58, %v836_v33 }
 0x117   : > { %v811_v23 = vadd.f32 %v6221_v43, %v772_v46  ;;  %v809_v48 = vadd.f32 %v6221_v43, %v770_v39  ;;  %v2085_v29 = vshrl.u32 %v6432_v9, 16  ;;  %v2088_v45 = vshll.u32 %v6432_v9, 16  ;;  %v5293_v18 = vpop.f32.mrb[24].mxu0 }
 0x118   : > { %7572 = vst [vmem:[#allocation8_spill] sm:$0xff] %v6499_v19  ;;  %vm1598_vm15 = vcmp.ge.s32.totalorder %v6253_v31, 0  ;;  %v1756_v44 = vsel %vm1596_vm9, %v842_v57, 0.0  ;;  %v1754_v11 = vsel %vm1594_vm10, %v840_v30, 0.0  ;;  %v6510_v55 = vpack.c.bf16 %v840_v30, %v1529_v10  ;;  %5318 = vmatmul.mubr.msk.bf16.gmra.mrb[48].mxu0 %vm528_vm1, %v6499_v19  ;;  %v711_v58 = vpop.f32.mrb[25].mxu0 }
 0x119   : > { %v6513_v33 = vsel %vm2013_vm13, %v2073_v50, %v2082_v61  ;;  %v843_v9 = vmax.f32 %v811_v23, 0.0  ;;  %v841_v34 = vmax.f32 %v809_v48, 0.0  ;;  %v2087_v1 = vrot.slane %v2085_v29, 3  ;;  %v5294_v53 = vpop.f32.mrb[26].mxu0 }
 0x11a   : > { %5412 = vmatmul.mubr.msk.bf16.gmra.mrb[8].mxu1 %vm528_vm1, %v6513_v33  ;;  %v2090_v51 = vrot.slane %v2088_v45, 4  ;;  %v6522_v46 = vpack.c.bf16 %v839_v3, %v6447_v26  ;;  %v775_v50 = vmul.f32 %v5293_v18, %v6212_v38  ;;  %v714_v39 = vpop.f32.mrb[27].mxu0  ;;  %vm1407_vm2 = vcmp.lt.s32.totalorder %v6258_v35, 16 }
 0x11b   : > { %v2112_v19 = vshrl.u32 %v6510_v55, 16  ;;  %v6527_v13 = vpack.c.bf16 %v843_v9, %v1756_v44  ;;  %v1531_v23 = vsel %vm1403_vm11, %v841_v34, 0.0  ;;  %v6531_v48 = vpack.c.bf16 %v841_v34, %v1754_v11 }
 0x11c   : > { %7573 = vst [vmem:[#allocation9_spill] sm:$0xff] %v6522_v46  ;;  %v6533_v29 = vpack.c.bf16 %v842_v57, %v1531_v23  ;;  %v2091_v45 = vor.u32 %v2090_v51, %v2087_v1  ;;  %5321 = vmatprep.mubr.msk.bf16.mxu0 %vm528_vm1, %v6522_v46  ;;  %v814_v26 = vadd.f32 %v6221_v43, %v775_v50  ;;  %vm1409_vm3 = vcmp.lt.s32.totalorder %v6255_v32, 16 }
 0x11d   : > { %v773_v3 = vmul.f32 %v6212_v38, %v711_v58  ;;  %v2115_v18 = vshll.u32 %v6510_v55, 16  ;;  %v1533_v5 = vsel %vm1405_vm12, %v843_v9, 0.0  ;;  %v2096_v44 = vrot.slane %v2094_v25, 3 }
 0x11e   : > { %v2099_v11 = vrot.slane %v2097_v21, 4  ;;  %v6544_v23 = vsel %vm2013_vm13, %v2082_v61, %v2091_v45  ;;  %v6546_v1 = vmax.f32 %v814_v26, 0.0  ;;  %v776_v50 = vmul.f32 %v5294_v53, %v6212_v38 }
 0x11f   : > { %v812_v51 = vadd.f32 %v6221_v43, %v773_v3  ;;  %5415 = vmatprep.mubr.msk.bf16.mxu1 %vm528_vm1, %v6544_v23  ;;  %v774_v55 = vmul.f32 %v6212_v38, %v714_v39  ;;  %v6553_v52 = vpack.c.bf16 %v841_v34, %v840_v30  ;;  %v2103_v62 = vshrl.u32 %v6489_v24, 16  ;;  %v5297_v21 = vpop.f32.mrb[28].mxu0 }
 0x120   : > { %v2100_v58 = vor.u32 %v2099_v11, %v2096_v44  ;;  %vm1604_vm4 = vcmp.ge.s32.totalorder %v6260_v36, 0  ;;  %v1760_v25 = vsel %vm1600_vm14, %v6546_v1, 0.0  ;;  %v815_v53 = vadd.f32 %v6221_v43, %v776_v50  ;;  %v727_v3 = vpop.f32.mrb[29].mxu0 }
 0x121   : > { %7574 = vst [vmem:[#allocation10_spill] sm:$0xff] %v6553_v52  ;;  %v844_v61 = vmax.f32 %v812_v51, 0.0  ;;  %v2106_v26 = vshll.u32 %v6489_v24, 16  ;;  %v813_v30 = vadd.f32 %v6221_v43, %v774_v55  ;;  %5322 = vmatmul.mubr.msk.bf16.gmra.mrb[52].mxu0 %vm528_vm1, %v6553_v52  ;;  %v2105_v34 = vrot.slane %v2103_v62, 3  ;;  %v5298_v22 = vpop.f32.mrb[30].mxu0 }
 0x122   : > { %v6563_v44 = vsel %vm2013_vm13, %v2091_v45, %v2100_v58  ;;  %v6568_v39 = vpack.c.bf16 %v843_v9, %v842_v57  ;;  %vm1602_vm5 = vcmp.ge.s32.totalorder %v6264_v41, 0  ;;  %v847_v24 = vmax.f32 %v815_v53, 0.0  ;;  %v730_v50 = vpop.f32.mrb[31].mxu0 }
 0x123   : > { %v1758_v11 = vsel %vm1598_vm15, %v844_v61, 0.0  ;;  %v1779_v51 = vpack.c.bf16 %v844_v61, %v1533_v5  ;;  %5416 = vmatmul.mubr.msk.bf16.gmra.mrb[12].mxu1 %vm528_vm1, %v6563_v44  ;;  %v2108_v45 = vrot.slane %v2106_v26, 4  ;;  %vm1413_vm6 = vcmp.lt.s32.totalorder %v6269_v59, 16 }
 0x124   : > { %7575 = vst [vmem:[#allocation11_spill] sm:$0xff] %v6568_v39  ;;  %v845_v62 = vmax.f32 %v813_v30, 0.0  ;;  %5325 = vmatprep.mubr.msk.bf16.mxu0 %vm528_vm1, %v6568_v39  ;;  %v779_v57 = vmul.f32 %v5297_v21, %v6212_v38  ;;  %v777_v31 = vmul.f32 %v6212_v38, %v727_v3  ;;  %v6582_v10 = vpack.c.bf16 %v847_v24, %v1760_v25 }
 0x125   : > { %v2130_v5 = vshrl.u32 %v1779_v51, 16  ;;  %v2114_v53 = vrot.slane %v2112_v19, 3  ;;  %vm1411_vm7 = vcmp.lt.s32.totalorder %v6290_v16, 16  ;;  %v2109_v30 = vor.u32 %v2108_v45, %v2105_v34 }
 0x126   : > { %v1535_v26 = vsel %vm1407_vm2, %v845_v62, 0.0  ;;  %v6587_v55 = vpack.c.bf16 %v845_v62, %v1758_v11  ;;  %v818_v39 = vadd.f32 %v6221_v43, %v779_v57  ;;  %v2133_v52 = vshll.u32 %v1779_v51, 16 }
 0x127   : > { %v1780_v21 = vpack.c.bf16 %v6546_v1, %v1535_v26  ;;  %v816_v3 = vadd.f32 %v6221_v43, %v777_v31  ;;  %v2117_v9 = vrot.slane %v2115_v18, 4  ;;  %v1537_v25 = vsel %vm1409_vm3, %v847_v24, 0.0 }
 0x128   : > { %v6595_v19 = vsel %vm2013_vm13, %v2100_v58, %v2109_v30  ;;  %v6597_v46 = vmax.f32 %v818_v39, 0.0  ;;  %v780_v35 = vmul.f32 %v5298_v22, %v6212_v38  ;;  %v778_v51 = vmul.f32 %v6212_v38, %v730_v50 }
 0x129   : > { %5419 = vmatprep.mubr.msk.bf16.mxu1 %vm528_vm1, %v6595_v19  ;;  %v848_v34 = vmax.f32 %v816_v3, 0.0  ;;  %v2118_v11 = vor.u32 %v2117_v9, %v2114_v53  ;;  %v6603_v45 = vpack.c.bf16 %v845_v62, %v844_v61  ;;  %v2121_v58 = vshrl.u32 %v6533_v29, 16 }
 0x12a   : > { %v819_v32 = vadd.f32 %v6221_v43, %v780_v35  ;;  %v2124_v39 = vshll.u32 %v6533_v29, 16  ;;  %v6613_v22 = vsel %vm1604_vm4, %v6597_v46, 0.0  ;;  %v817_v29 = vadd.f32 %v6221_v43, %v778_v51 }
 0x12b   : > { %v1781_v31 = vpack.c.bf16 %v848_v34, %v1537_v25  ;;  %v6616_v38 = vsel %vm2013_vm13, %v2109_v30, %v2118_v11  ;;  %5326 = vmatmul.mubr.msk.bf16.gmra.mrb[56].mxu0 %vm528_vm1, %v6603_v45  ;;  %v2123_v50 = vrot.slane %v2121_v58, 3  ;;  %v1762_v36 = vsel %vm1602_vm5, %v848_v34, 0.0 }
 0x12c   : > { %5420 = vmatmul.mubr.msk.bf16.gmra.mrb[16].mxu1 %vm528_vm1, %v6616_v38  ;;  %v6622_v61 = vmax.f32 %v819_v32, 0.0  ;;  %v2126_v62 = vrot.slane %v2124_v39, 4  ;;  %v6628_v53 = vpack.c.bf16 %v847_v24, %v6546_v1  ;;  %v2132_v26 = vrot.slane %v2130_v5, 3 }
 0x12d   : > { %v2148_v9 = vshrl.u32 %v1781_v31, 16  ;;  %v849_v25 = vmax.f32 %v817_v29, 0.0  ;;  %v2151_v35 = vshll.u32 %v1781_v31, 16  ;;  %v7577_v51 = vmov 0.0  }
 0x12e   : > { %7576 = vst [vmem:[#allocation12_spill] sm:$0xff] %v6628_v53  ;;  %v1541_v30 = vsel %vm1413_vm6, %v6622_v61, 0.0  ;;  %v6635_v3 = vpack.c.bf16 %v6622_v61, %v6613_v22  ;;  %v2127_v43 = vor.u32 %v2126_v62, %v2123_v50  ;;  %5329 = vmatprep.mubr.msk.bf16.mxu0 %vm528_vm1, %v6628_v53  ;;  %v2135_v41 = vrot.slane %v2133_v52, 4 }
 0x12f   : > { %v6638_v32 = vpack.c.bf16 %v7577_v51, %v1541_v30  ;;  %v2139_v1 = vshrl.u32 %v1780_v21, 16  ;;  %v2768_v24 = vpack.c.bf16 %v1541_v30, %v1541_v30  ;;  %v1539_v59 = vsel %vm1411_vm7, %v849_v25, 0.0 }
 0x130   : > { %v6644_v5 = vpack.c.bf16 %v849_v25, %v1762_v36  ;;  %v6647_v58 = vsel %vm2013_vm13, %v2118_v11, %v2127_v43  ;;  %v1782_v39 = vpack.c.bf16 %v1539_v59, %v1539_v59  ;;  %v2767_v31 = vpack.c.bf16 %v6597_v46, %v1539_v59 }
 0x131   : > { %5423 = vmatprep.mubr.msk.bf16.mxu1 %vm528_vm1, %v6647_v58  ;;  %v2136_v29 = vor.u32 %v2135_v41, %v2132_v26  ;;  %v6652_v50 = vpack.c.bf16 %v849_v25, %v848_v34  ;;  %v2141_v62 = vrot.slane %v2139_v1, 3  ;;  %v2142_v16 = vshll.u32 %v1780_v21, 16 }
 0x132   : > { %v2029_v36 = vsel %vm2013_vm13, %v6189_v17, %v6334_v56  ;;  %v2150_v30 = vrot.slane %v2148_v9, 3  ;;  %v2153_v51 = vrot.slane %v2151_v35, 4  ;;  %v2772_v26 = vshrl.u32 %v2767_v31, 16 }
 0x133   : > { %7578 = vst [vmem:[#allocation13_spill] sm:$0xff] %v6652_v50  ;;  %v6660_v11 = vsel %vm2013_vm13, %v2127_v43, %v2136_v29  ;;  %5330 = vmatmul.mubr.msk.bf16.gmra.mrb[60].mxu0 %vm528_vm1, %v6652_v50  ;;  %v2144_v34 = vrot.slane %v2142_v16, 4  ;;  %v2775_v21 = vshll.u32 %v2767_v31, 16  ;;  %v2781_v25 = vshrl.u32 %v2768_v24, 16 }
 0x134   : > { %5424 = vmatmul.mubr.msk.bf16.gmra.mrb[20].mxu1 %vm528_vm1, %v6660_v11  ;;  %5335 = vmatprep.mubr.msk.bf16.mxu0 %vm528_vm1, %v2029_v36  ;;  %v2784_v41 = vshll.u32 %v2768_v24, 16  ;;  %vm2395_vm8 = vsmask.f32 7424  ;;  %v2154_v56 = vor.u32 %v2153_v51, %v2150_v30  ;;  %v2774_v1 = vrot.slane %v2772_v26, 3 }
 0x135   : > { %v2157_v43 = vshrl.u32 %v1782_v39, 16  ;;  %v2160_v59 = vshll.u32 %v1782_v39, 16  ;;  %v2145_v18 = vor.u32 %v2144_v34, %v2141_v62  ;;  %v2777_v57 = vrot.slane %v2775_v21, 4 }
 0x136   : > { %v2783_v52 = vrot.slane %v2781_v25, 3  ;;  %v2786_v9 = vrot.slane %v2784_v41, 4  ;;  %v3201_v35 = vshrl.u32 %v6635_v3, 16  ;;  %v2399_v16 = vshll.u32 %v6283_v7, 16 }
 0x137   : > { %v2159_v50 = vrot.slane %v2157_v43, 3  ;;  %v2162_v53 = vrot.slane %v2160_v59, 4  ;;  %v6670_v36 = vsel %vm2013_vm13, %v2136_v29, %v2145_v18  ;;  %v6673_v24 = vsel %vm2013_vm13, %v2145_v18, %v2154_v56 }
 0x138   : > { %v6675_v31 = vor.u32 %v2777_v57, %v2774_v1  ;;  %v2787_v30 = vor.u32 %v2786_v9, %v2783_v52  ;;  %5427 = vmatprep.mubr.msk.bf16.mxu1 %vm528_vm1, %v6670_v36  ;;  %v6679_v62 = vrot.slane %v2399_v16, 1  ;;  %v2572_v51 = vsel %vm577_vm0, %v6305_v37, 0 }
 0x139   : > { %v2163_v39 = vor.u32 %v2162_v53, %v2159_v50  ;;  %v2415_v26 = vshll.u32 %v6326_v42, 16  ;;  %v6692_v57 = vpack.c.bf16 %v6622_v61, %v6597_v46  ;;  %v2423_v53 = vshll.u32 %v6322_v12, 16 }
 0x13a   : > { %v6686_v29 = vsel %vm2013_vm13, %v2154_v56, %v6675_v31  ;;  %v2788_v18 = vsel %vm2013_vm13, %v6675_v31, %v2787_v30  ;;  %v7579_v50 = vshrl.u32 %v6283_v7, 16  ;;  %v7580_v34 = vshrl.u32 %v6274_v0, 16 }
 0x13b   : > { %5336 = vmatmul.mubr.msk.bf16.vlgmr.msra.gmra.mrb[32].mxu0 %vm528_vm1, %v6354_v20  ;;  %v6698_v37 = vsel %vm2013_vm13, %v2154_v56, %v2163_v39  ;;  %v2417_v25 = vrot.slane %v2415_v26, 1  ;;  %v2515_v46 = vshrl.u32 %v6644_v5, 16  ;;  %v2425_v20 = vrot.slane %v2423_v53, 1 }
 0x13c   : > { %v2405_v52 = vor.u32 %v7579_v50, %v6679_v62  ;;  %v2413_v21 = vor.u32 %v7580_v34, %v6318_v15  ;;  %5428 = vmatmul.mubr.msk.bf16.gmra.mrb[24].mxu1 %vm528_vm1, %v6673_v24  ;;  %5339 = vmatprep.mubr.msk.bf16.mxu0 %vm528_vm1, %v6380_v28  ;;  %v2431_v61 = vshll.u32 %v6369_v47, 16  ;;  %v2439_v41 = vshll.u32 %v6365_v49, 16 }
 0x13d   : > { %5431 = vmatprep.mubr.msk.bf16.mxu1 %vm528_vm1, %v6686_v29  ;;  %5368 = vmatpush3.bf16.msra.mxu0 %v2572_v51  ;;  %v7581_v56 = vshrl.u32 %v6326_v42, 16  ;;  %v2447_v43 = vshll.u32 %v6424_v2, 16  ;;  %v7582_v59 = vshrl.u32 %v6322_v12, 16  ;;  %v2455_v39 = vshll.u32 %v6420_v8, 16 }
 0x13e   : > { %v6717_v0 = vsel %vm2395_vm8, %v2405_v52, %v6318_v15  ;;  %v6720_v7 = vsel %vm2395_vm8, %v2413_v21, %v2417_v25  ;;  %v2433_v16 = vrot.slane %v2431_v61, 1  ;;  %v2441_v30 = vrot.slane %v2439_v41, 1 }
 0x13f   : > { %v2421_v1 = vor.u32 %v7581_v56, %v2417_v25  ;;  %v2429_v9 = vor.u32 %v7582_v59, %v2425_v20  ;;  %v2449_v15 = vrot.slane %v2447_v43, 1  ;;  %v2463_v26 = vshll.u32 %v6484_v54, 16 }
 0x140   : > { %v2471_v53 = vshll.u32 %v6480_v63, 16  ;;  %v7583_v50 = vshrl.u32 %v6369_v47, 16  ;;  %v7584_v12 = vshrl.u32 %v6365_v49, 16  ;;  %v2457_v21 = vrot.slane %v2455_v39, 1 }
 0x141   : > { %v6729_v51 = vsel %vm2395_vm8, %v2421_v1, %v2425_v20  ;;  %v6734_v42 = vsel %vm2395_vm8, %v2429_v9, %v2433_v16  ;;  %v7585_v25 = vshrl.u32 %v6424_v2, 16  ;;  %v2465_v20 = vrot.slane %v2463_v26, 1 }
 0x142   : > { %v2437_v52 = vor.u32 %v7583_v50, %v2433_v16  ;;  %v2445_v34 = vor.u32 %v7584_v12, %v2441_v30  ;;  %v2473_v41 = vrot.slane %v2471_v53, 1  ;;  %v2479_v56 = vshll.u32 %v6531_v48, 16 }
 0x143   : > { %v2453_v61 = vor.u32 %v7585_v25, %v2449_v15  ;;  %v7586_v47 = vshrl.u32 %v6420_v8, 16  ;;  %v2487_v49 = vshll.u32 %v6527_v13, 16  ;;  %5340 = vmatmul.mubr.msk.bf16.gmra.mrb[36].mxu0 %vm528_vm1, %v6435_v60  ;;  %v7587_v9 = vshrl.u32 %v6484_v54, 16 }
 0x144   : > { %v6744_v1 = vsel %vm2395_vm8, %v2437_v52, %v2441_v30  ;;  %v6747_v43 = vsel %vm2395_vm8, %v2445_v34, %v2449_v15  ;;  %v7588_v30 = vshrl.u32 %v6480_v63, 16  ;;  %v2481_v26 = vrot.slane %v2479_v56, 1  ;;  %5432 = vmatmul.mubr.msk.bf16.gmra.mrb[28].mxu1 %vm528_vm1, %v2788_v18  ;;  %5343 = vmatprep.mubr.msk.bf16.mxu0 %vm528_vm1, %v6450_v14 }
 0x145   : > { %v2461_v59 = vor.u32 %v7586_v47, %v2457_v21  ;;  %v6755_v2 = vsel %vm2395_vm8, %v2453_v61, %v2457_v21  ;;  %v2469_v16 = vor.u32 %v7587_v9, %v2465_v20  ;;  %v2489_v15 = vrot.slane %v2487_v49, 1  ;;  %5437 = vmatprep.mubr.msk.bf16.mxu1 %vm528_vm1, %v6281_v6 }
 0x146   : > { %v2477_v39 = vor.u32 %v7588_v30, %v2473_v41  ;;  %v2495_v53 = vshll.u32 %v6587_v55, 16  ;;  %v2503_v50 = vshll.u32 %v6582_v10, 16  ;;  %v7589_v18 = vshrl.u32 %v6531_v48, 16 }
 0x147   : > { %v6765_v8 = vsel %vm2395_vm8, %v2461_v59, %v2465_v20  ;;  %v6772_v63 = vsel %vm2395_vm8, %v2469_v16, %v2473_v41  ;;  %v2511_v12 = vshll.u32 %v6644_v5, 16  ;;  %v7590_v34 = vshrl.u32 %v6527_v13, 16 }
 0x148   : > { %v6775_v54 = vsel %vm2395_vm8, %v2477_v39, %v2481_v26  ;;  %v2485_v52 = vor.u32 %v7589_v18, %v2481_v26  ;;  %v2497_v25 = vrot.slane %v2495_v53, 1  ;;  %v2505_v61 = vrot.slane %v2503_v50, 1 }
 0x149   : > { %v2493_v21 = vor.u32 %v7590_v34, %v2489_v15  ;;  %v7591_v20 = vpack.c.bf16 %v6613_v22, %v6613_v22  ;;  %v2513_v56 = vrot.slane %v2511_v12, 1  ;;  %v3197_v47 = vshll.u32 %v6635_v3, 16  ;;  %v7595_v12 = vld [vmem:[#allocation2_spill] sm:$0xff] }
 0x14a   : > { %v6786_v41 = vsel %vm2395_vm8, %v2485_v52, %v2489_v15  ;;  %v3411_v48 = vshrl.u32 %v6638_v32, 16  ;;  %v7592_v13 = vshrl.u32 %v6587_v55, 16  ;;  %v7593_v49 = vshrl.u32 %v6582_v10, 16  ;;  %v4970_v10 = vld [vmem:[%s7530_s4 + $0xc] sm:$0x3] }
 0x14b   : > { %v2519_v6 = vshll.u32 %v7591_v20, 16  ;;  %v6791_v59 = vsel %vm2395_vm8, %v2493_v21, %v2497_v25  ;;  %v2517_v22 = vor.u32 %v2515_v46, %v2513_v56  ;;  %v3199_v30 = vrot.slane %v3197_v47, 1  ;;  %5344 = vmatmul.mubr.msk.bf16.gmra.mrb[40].mxu0 %vm528_vm1, %v6476_v27  ;;  %v7600_v20 = vld [vmem:[#allocation7_spill] sm:$0xff]  ;;  %v7603_v47 = vld [vmem:[#allocation10_spill] sm:$0xff] }
 0x14c   : > { %v2501_v5 = vor.u32 %v7592_v13, %v2497_v25  ;;  %v2509_v9 = vor.u32 %v7593_v49, %v2505_v61  ;;  %v3413_v39 = vrot.slane %v3411_v48, 3  ;;  %v3414_v26 = vshll.u32 %v6638_v32, 16  ;;  %5438 = vmatmul.mubr.msk.bf16.vlgmr.msra.gmra.mrb[0].mxu1 %vm528_vm1, %v6277_v4  ;;  %5347 = vmatprep.mubr.msk.bf16.mxu0 %vm528_vm1, %v6513_v33  ;;  %v7596_v25 = vld [vmem:[#allocation3_spill] sm:$0xff] }
 0x14d   : > { %v2521_v16 = vrot.slane %v2519_v6, 1  ;;  %v3212_v15 = vsel %vm577_vm0, %v6385_v40, 0  ;;  %v7594_v53 = vmov 0   ;;  %v6818_v40 = vsel %vm2395_vm8, %v2517_v22, %v3199_v30  ;;  %5441 = vmatprep.mubr.msk.bf16.mxu1 %vm528_vm1, %v7595_v12  ;;  %v7601_v6 = vld [vmem:[#allocation8_spill] sm:$0xff]  ;;  %v7604_v13 = vld [vmem:[#allocation11_spill] sm:$0xff] }
 0x14e   : > { %v6801_v50 = vrot.slane %v7594_v53, 1  ;;  %v6804_v18 = vsel %vm2395_vm8, %v2501_v5, %v2505_v61  ;;  %v6807_v55 = vsel %vm2395_vm8, %v2509_v9, %v2513_v56  ;;  %v3203_v46 = vor.u32 %v3201_v35, %v3199_v30  ;;  %5470 = vmatpush3.bf16.msra.mxu1 %v3212_v15  ;;  %v7597_v61 = vld [vmem:[#allocation4_spill] sm:$0xff]  ;;  %v7602_v56 = vld [vmem:[#allocation9_spill] sm:$0xff]  ;;  %v4987_v49 = vld [vmem:[%s7530_s4 + $0xe] sm:$0x3] }
 0x14f   : > { %v6815_v32 = vsel %vm2395_vm8, %v2517_v22, %v2521_v16  ;;  %v3416_v52 = vrot.slane %v3414_v26, 4  ;;  %5936 = vmatprep.subr.msk.bf16.mxu1 %vm577_vm0, %v4970_v10  ;;  %v7605_v5 = vld [vmem:[#allocation12_spill] sm:$0xff] }
 0x150   : > { %v6830_v34 = vsel %vm2395_vm8, %v3203_v46, %v6801_v50  ;;  %v2402_v48 = vsel %vm2395_vm8, %v6801_v50, %v6679_v62  ;;  %v3427_v62 = vsel %vm577_vm0, %v4970_v10, 0  ;;  %v5003_v9 = vld [vmem:[%s7530_s4 + $0x10] sm:$0x3]  ;;  %v7128_v46 = vld [vmem:[%s7532_s6] ss:$0 sm:$0xff] }
 0x151   : > { %v3417_v21 = vor.u32 %v3416_v52, %v3413_v39 }
 0x153   : > { %v6835_v3 = vsel %vm2013_vm13, %v6675_v31, %v3417_v21  ;;  %v6839_v35 = vsel %vm2013_vm13, %v3417_v21, %v6189_v17  ;;  %5348 = vmatmul.mubr.msk.bf16.gmra.mrb[44].mxu0 %vm528_vm1, %v6544_v23  ;;  %v7598_v31 = vld [vmem:[#allocation5_spill] sm:$0xff]  ;;  %v7599_v17 = vld [vmem:[#allocation6_spill] sm:$0xff] }
 0x154   : > { %5442 = vmatmul.mubr.msk.bf16.gmra.mrb[4].mxu1 %vm528_vm1, %v7596_v25  ;;  %5351 = vmatprep.mubr.msk.bf16.mxu0 %vm528_vm1, %v6563_v44 }
 0x155   : > { %5445 = vmatprep.mubr.msk.bf16.mxu1 %vm528_vm1, %v7597_v61 }
 0x15b   : > { %5352 = vmatmul.mubr.msk.bf16.gmra.mrb[48].mxu0 %vm528_vm1, %v6595_v19 }
 0x15c   : > { %5446 = vmatmul.mubr.msk.bf16.gmra.mrb[8].mxu1 %vm528_vm1, %v7598_v31  ;;  %5355 = vmatprep.mubr.msk.bf16.mxu0 %vm528_vm1, %v6616_v38 }
 0x15d   : > { %5449 = vmatprep.mubr.msk.bf16.mxu1 %vm528_vm1, %v7599_v17 }
 0x163   : > { %5356 = vmatmul.mubr.msk.bf16.gmra.mrb[52].mxu0 %vm528_vm1, %v6647_v58 }
 0x164   : > { %5450 = vmatmul.mubr.msk.bf16.gmra.mrb[12].mxu1 %vm528_vm1, %v7600_v20  ;;  %5359 = vmatprep.mubr.msk.bf16.mxu0 %vm528_vm1, %v6660_v11 }
 0x165   : > { %5453 = vmatprep.mubr.msk.bf16.mxu1 %vm528_vm1, %v7601_v6 }
 0x16b   : > { %5360 = vmatmul.mubr.msk.bf16.gmra.mrb[56].mxu0 %vm528_vm1, %v6670_v36 }
 0x16c   : > { %5454 = vmatmul.mubr.msk.bf16.gmra.mrb[16].mxu1 %vm528_vm1, %v7602_v56  ;;  %5363 = vmatprep.mubr.msk.bf16.mxu0 %vm528_vm1, %v6673_v24 }
 0x16d   : > { %5457 = vmatprep.mubr.msk.bf16.mxu1 %vm528_vm1, %v7603_v47 }
 0x173   : > { %5364 = vmatmul.mubr.msk.bf16.gmra.mrb[60].mxu0 %vm528_vm1, %v6698_v37  ;;  %v7606_v37 = vld [vmem:[#allocation13_spill] sm:$0xff] }
 0x174   : > { %5458 = vmatmul.mubr.msk.bf16.gmra.mrb[20].mxu1 %vm528_vm1, %v7604_v13  ;;  %5369 = vmatprep.mubr.msk.bf16.mxu0 %vm528_vm1, %v2402_v48 }
 0x175   : > { %5461 = vmatprep.mubr.msk.bf16.mxu1 %vm528_vm1, %v6603_v45 }
 0x17b   : > { %5370 = vmatmul.mubr.msk.bf16.vlgmr.msra.gmra.mrb[32].mxu0 %vm528_vm1, %v6717_v0 }
 0x17c   : > { %5462 = vmatmul.mubr.msk.bf16.gmra.mrb[24].mxu1 %vm528_vm1, %v7605_v5  ;;  %5373 = vmatprep.mubr.msk.bf16.mxu0 %vm528_vm1, %v6720_v7 }
 0x17d   : > { %5465 = vmatprep.mubr.msk.bf16.mxu1 %vm528_vm1, %v7606_v37 }
 0x183   : > { %5374 = vmatmul.mubr.msk.bf16.gmra.mrb[36].mxu0 %vm528_vm1, %v6729_v51 }
 0x184   : > { %5466 = vmatmul.mubr.msk.bf16.gmra.mrb[28].mxu1 %vm528_vm1, %v6692_v57  ;;  %5377 = vmatprep.mubr.msk.bf16.mxu0 %vm528_vm1, %v6734_v42 }
 0x185   : > { %5471 = vmatprep.mubr.msk.bf16.mxu1 %vm528_vm1, %v6717_v0  ;;  %v3625_v0 = vsel %vm577_vm0, %v4987_v49, 0 }
 0x18b   : > { %5378 = vmatmul.mubr.msk.bf16.gmra.mrb[40].mxu0 %vm528_vm1, %v6744_v1 }
 0x18c   : > { %5472 = vmatmul.mubr.msk.bf16.vlgmr.msra.gmra.mrb[0].mxu1 %vm528_vm1, %v6720_v7  ;;  %5381 = vmatprep.mubr.msk.bf16.mxu0 %vm528_vm1, %v6747_v43 }
 0x18d   : > { %5504 = vmatpush3.bf16.msra.mxu1 %v3427_v62  ;;  %5475 = vmatprep.mubr.msk.bf16.mxu1 %vm528_vm1, %v6729_v51 }
 0x18e   : > { %5937 = vmatprep.subr.msk.bf16.mxu1 %vm577_vm0, %v4987_v49 }
 0x193   : > { %5382 = vmatmul.mubr.msk.bf16.gmra.mrb[44].mxu0 %vm528_vm1, %v6755_v2 }
 0x194   : > { %5476 = vmatmul.mubr.msk.bf16.gmra.mrb[4].mxu1 %vm528_vm1, %v6734_v42  ;;  %5385 = vmatprep.mubr.msk.bf16.mxu0 %vm528_vm1, %v6765_v8 }
 0x195   : > { %5479 = vmatprep.mubr.msk.bf16.mxu1 %vm528_vm1, %v6744_v1 }
 0x19b   : > { %5386 = vmatmul.mubr.msk.bf16.gmra.mrb[48].mxu0 %vm528_vm1, %v6772_v63 }
 0x19c   : > { %5480 = vmatmul.mubr.msk.bf16.gmra.mrb[8].mxu1 %vm528_vm1, %v6747_v43  ;;  %5389 = vmatprep.mubr.msk.bf16.mxu0 %vm528_vm1, %v6775_v54 }
 0x19d   : > { %5483 = vmatprep.mubr.msk.bf16.mxu1 %vm528_vm1, %v6755_v2 }
 0x1a3   : > { %5390 = vmatmul.mubr.msk.bf16.gmra.mrb[52].mxu0 %vm528_vm1, %v6786_v41 }
 0x1a4   : > { %5484 = vmatmul.mubr.msk.bf16.gmra.mrb[12].mxu1 %vm528_vm1, %v6765_v8  ;;  %5393 = vmatprep.mubr.msk.bf16.mxu0 %vm528_vm1, %v6791_v59 }
 0x1a5   : > { %5487 = vmatprep.mubr.msk.bf16.mxu1 %vm528_vm1, %v6772_v63 }
 0x1ab   : > { %5394 = vmatmul.mubr.msk.bf16.gmra.mrb[56].mxu0 %vm528_vm1, %v6804_v18 }
 0x1ac   : > { %5488 = vmatmul.mubr.msk.bf16.gmra.mrb[16].mxu1 %vm528_vm1, %v6775_v54  ;;  %5397 = vmatprep.mubr.msk.bf16.mxu0 %vm528_vm1, %v6807_v55 }
 0x1ad   : > { %5491 = vmatprep.mubr.msk.bf16.mxu1 %vm528_vm1, %v6786_v41 }
 0x1b3   : > { %5398 = vmatmul.mubr.msk.bf16.gmra.mrb[60].mxu0 %vm528_vm1, %v6815_v32  ;;  %v7123_v32 = vld [vmem:[%s7531_s5] ss:$0 sm:$0xff] }
 0x1b4   : > { %5492 = vmatmul.mubr.msk.bf16.gmra.mrb[20].mxu1 %vm528_vm1, %v6791_v59 }
 0x1b5   : > { %5495 = vmatprep.mubr.msk.bf16.mxu1 %vm528_vm1, %v6804_v18 }
 0x1bc   : > { %5496 = vmatmul.mubr.msk.bf16.gmra.mrb[24].mxu1 %vm528_vm1, %v6807_v55 }
 0x1bd   : > { %5499 = vmatprep.mubr.msk.bf16.mxu1 %vm528_vm1, %v6818_v40 }
 0x1c4   : > { %5500 = vmatmul.mubr.msk.bf16.gmra.mrb[28].mxu1 %vm528_vm1, %v6830_v34 }
 0x1c5   : > { %5505 = vmatprep.mubr.msk.bf16.mxu1 %vm528_vm1, %v6380_v28  ;;  %v4148_v28 = vld [vmem:[%s7533_s7] sm:$0x3] }
 0x1c6   : > { %5939 = vmatprep.subr.msk.bf16.mxu0 %vm577_vm0, %v4148_v28 }
 0x1cc   : > { %5506 = vmatmul.mubr.msk.bf16.vlgmr.msra.gmra.mrb[0].mxu1 %vm528_vm1, %v6435_v60  ;;  %v3827_v60 = vsel %vm577_vm0, %v5003_v9, 0 }
 0x1cd   : > { %5538 = vmatpush3.bf16.msra.mxu1 %v3625_v0  ;;  %5509 = vmatprep.mubr.msk.bf16.mxu1 %vm528_vm1, %v6450_v14  ;;  %v4198_v14 = vsel %vm577_vm0, %v4148_v28, 0 }
 0x1ce   : > { %5938 = vmatprep.subr.msk.bf16.mxu1 %vm577_vm0, %v5003_v9  ;;  %5606 = vmatpush3.bf16.msra.mxu0 %v4198_v14 }
 0x1d4   : > { %5510 = vmatmul.mubr.msk.bf16.gmra.mrb[4].mxu1 %vm528_vm1, %v6476_v27 }
 0x1d5   : > { %5513 = vmatprep.mubr.msk.bf16.mxu1 %vm528_vm1, %v6513_v33 }
 0x1dc   : > { %5514 = vmatmul.mubr.msk.bf16.gmra.mrb[8].mxu1 %vm528_vm1, %v6544_v23 }
 0x1dd   : > { %5517 = vmatprep.mubr.msk.bf16.mxu1 %vm528_vm1, %v6563_v44 }
 0x1e4   : > { %5518 = vmatmul.mubr.msk.bf16.gmra.mrb[12].mxu1 %vm528_vm1, %v6595_v19 }
 0x1e5   : > { %5521 = vmatprep.mubr.msk.bf16.mxu1 %vm528_vm1, %v6616_v38 }
 0x1ec   : > { %5522 = vmatmul.mubr.msk.bf16.gmra.mrb[16].mxu1 %vm528_vm1, %v6647_v58 }
 0x1ed   : > { %5525 = vmatprep.mubr.msk.bf16.mxu1 %vm528_vm1, %v6660_v11 }
 0x1f4   : > { %5526 = vmatmul.mubr.msk.bf16.gmra.mrb[20].mxu1 %vm528_vm1, %v6670_v36 }
 0x1f5   : > { %5529 = vmatprep.mubr.msk.bf16.mxu1 %vm528_vm1, %v6673_v24 }
 0x1fc   : > { %5530 = vmatmul.mubr.msk.bf16.gmra.mrb[24].mxu1 %vm528_vm1, %v6686_v29 }
 0x1fd   : > { %5533 = vmatprep.mubr.msk.bf16.mxu1 %vm528_vm1, %v6835_v3 }
 0x204   : > { %5534 = vmatmul.mubr.msk.bf16.gmra.mrb[28].mxu1 %vm528_vm1, %v6839_v35 }
 0x205   : > { %5539 = vmatprep.mubr.msk.bf16.mxu1 %vm528_vm1, %v6277_v4  ;;  %v7607_v4 = vmov 0.0|0.0  }
 0x20c   : > { %5540 = vmatmul.mubr.msk.bf16.vlgmr.msra.gmra.mrb[0].mxu1 %vm528_vm1, %v7595_v12 }
 0x20d   : > { %5572 = vmatpush3.bf16.msra.mxu1 %v3827_v60  ;;  %5543 = vmatprep.mubr.msk.bf16.mxu1 %vm528_vm1, %v7596_v25 }
 0x214   : > { %5544 = vmatmul.mubr.msk.bf16.gmra.mrb[4].mxu1 %vm528_vm1, %v7597_v61 }
 0x215   : > { %5547 = vmatprep.mubr.msk.bf16.mxu1 %vm528_vm1, %v7598_v31 }
 0x21c   : > { %5548 = vmatmul.mubr.msk.bf16.gmra.mrb[8].mxu1 %vm528_vm1, %v7599_v17 }
 0x21d   : > { %5551 = vmatprep.mubr.msk.bf16.mxu1 %vm528_vm1, %v7600_v20 }
 0x224   : > { %5552 = vmatmul.mubr.msk.bf16.gmra.mrb[12].mxu1 %vm528_vm1, %v7601_v6 }
 0x225   : > { %5555 = vmatprep.mubr.msk.bf16.mxu1 %vm528_vm1, %v7602_v56 }
 0x22c   : > { %5556 = vmatmul.mubr.msk.bf16.gmra.mrb[16].mxu1 %vm528_vm1, %v7603_v47 }
 0x22d   : > { %5559 = vmatprep.mubr.msk.bf16.mxu1 %vm528_vm1, %v7604_v13 }
 0x234   : > { %5560 = vmatmul.mubr.msk.bf16.gmra.mrb[20].mxu1 %vm528_vm1, %v6603_v45 }
 0x235   : > { %5563 = vmatprep.mubr.msk.bf16.mxu1 %vm528_vm1, %v7605_v5 }
 0x23c   : > { %5564 = vmatmul.mubr.msk.bf16.gmra.mrb[24].mxu1 %vm528_vm1, %v7606_v37 }
 0x23d   : > { %5567 = vmatprep.mubr.msk.bf16.mxu1 %vm528_vm1, %v6692_v57 }
 0x244   : > { %5568 = vmatmul.mubr.bf16.gmra.mrb[28].mxu1 %v7607_v4 }
 0x245   : > { %5573 = vmatprep.mubr.msk.bf16.mxu1 %vm528_vm1, %v6720_v7 }
 0x24c   : > { %5574 = vmatmul.mubr.msk.bf16.vlgmr.msra.gmra.mrb[0].mxu1 %vm528_vm1, %v6729_v51 }
 0x24d   : > { %5577 = vmatprep.mubr.msk.bf16.mxu1 %vm528_vm1, %v6734_v42 }
 0x24e   : > { %v5371_v27 = vpop.f32.mrb[32].mxu0 }
 0x24f   : > { %v2608_v33 = vpop.f32.mrb[33].mxu0 }
 0x250   : > { %v5372_v23 = vpop.f32.mrb[34].mxu0 }
 0x251   : > { %v2611_v44 = vpop.f32.mrb[35].mxu0 }
 0x254   : > { %5578 = vmatmul.mubr.msk.bf16.gmra.mrb[4].mxu1 %vm528_vm1, %v6744_v1 }
 0x255   : > { %5581 = vmatprep.mubr.msk.bf16.mxu1 %vm528_vm1, %v6747_v43 }
 0x256   : > { %v5375_v19 = vpop.f32.mrb[36].mxu0 }
 0x257   : > { %v7040_v45 = vpop.f32.mrb[37].mxu0 }
 0x258   : > { %v7042_v38 = vpop.f32.mrb[38].mxu0 }
 0x259   : > { %v7044_v58 = vpop.f32.mrb[39].mxu0 }
 0x25c   : > { %5582 = vmatmul.mubr.msk.bf16.gmra.mrb[8].mxu1 %vm528_vm1, %v6755_v2 }
 0x25d   : > { %5585 = vmatprep.mubr.msk.bf16.mxu1 %vm528_vm1, %v6765_v8 }
 0x25e   : > { %v7050_v11 = vpop.f32.mrb[40].mxu0 }
 0x25f   : > { %v7052_v36 = vpop.f32.mrb[41].mxu0 }
 0x260   : > { %v7054_v24 = vpop.f32.mrb[42].mxu0 }
 0x261   : > { %v7056_v29 = vpop.f32.mrb[43].mxu0 }
 0x264   : > { %5586 = vmatmul.mubr.msk.bf16.gmra.mrb[12].mxu1 %vm528_vm1, %v6772_v63 }
 0x265   : > { %5589 = vmatprep.mubr.msk.bf16.mxu1 %vm528_vm1, %v6775_v54 }
 0x266   : > { %v7062_v57 = vpop.f32.mrb[44].mxu0 }
 0x267   : > { %v7064_v7 = vpop.f32.mrb[45].mxu0 }
 0x268   : > { %v7066_v51 = vpop.f32.mrb[46].mxu0 }
 0x269   : > { %v7068_v42 = vpop.f32.mrb[47].mxu0 }
 0x26c   : > { %5590 = vmatmul.mubr.msk.bf16.gmra.mrb[16].mxu1 %vm528_vm1, %v6786_v41 }
 0x26d   : > { %5593 = vmatprep.mubr.msk.bf16.mxu1 %vm528_vm1, %v6791_v59 }
 0x26e   : > { %v7074_v1 = vpop.f32.mrb[48].mxu0 }
 0x26f   : > { %v7076_v43 = vpop.f32.mrb[49].mxu0 }
 0x270   : > { %v7078_v2 = vpop.f32.mrb[50].mxu0 }
 0x271   : > { %v7080_v8 = vpop.f32.mrb[51].mxu0 }
 0x274   : > { %5594 = vmatmul.mubr.msk.bf16.gmra.mrb[20].mxu1 %vm528_vm1, %v6804_v18 }
 0x275   : > { %5597 = vmatprep.mubr.msk.bf16.mxu1 %vm528_vm1, %v6807_v55  ;;  %v4471_v55 = vld [vmem:[%s7536_s10] sm:$0x3] }
 0x276   : > { %v7086_v63 = vpop.f32.mrb[52].mxu0  ;;  %5940 = vmatprep.subr.msk.bf16.mxu0 %vm577_vm0, %v4471_v55 }
 0x277   : > { %v7088_v54 = vpop.f32.mrb[53].mxu0 }
 0x278   : > { %v7090_v41 = vpop.f32.mrb[54].mxu0 }
 0x279   : > { %v7092_v59 = vpop.f32.mrb[55].mxu0 }
 0x27c   : > { %5598 = vmatmul.mubr.msk.bf16.gmra.mrb[24].mxu1 %vm528_vm1, %v6818_v40 }
 0x27d   : > { %5601 = vmatprep.mubr.msk.bf16.mxu1 %vm528_vm1, %v6830_v34 }
 0x27e   : > { %v7098_v16 = vpop.f32.mrb[56].mxu0 }
 0x27f   : > { %v7100_v22 = vpop.f32.mrb[57].mxu0 }
 0x280   : > { %v7102_v30 = vpop.f32.mrb[58].mxu0 }
 0x281   : > { %v7104_v39 = vpop.f32.mrb[59].mxu0 }
 0x284   : > { %5602 = vmatmul.mubr.msk.bf16.gmra.mrb[28].mxu1 %vm528_vm1, %v6801_v50 }
 0x286   : > { %v7108_v26 = vpop.f32.mrb[60].mxu0 }
 0x287   : > { %v7110_v15 = vpop.f32.mrb[61].mxu0 }
 0x288   : > { %v7112_v53 = vpop.f32.mrb[62].mxu0 }
 0x289   : > { %v7114_v18 = vpop.f32.mrb[63].mxu0 }
 0x31f   : > { %v5575_v10 = vpop.f32.mrb[0].mxu1 }
 0x320   : > { %v5673_v50 = vadd.f32 %v5575_v10, %v5371_v27  ;;  %v3863_v40 = vpop.f32.mrb[1].mxu1  ;;  %v4480_v10 = vsel %vm577_vm0, %v4471_v55, 0  ;;  %vm4675_vm0 = vcmask 64512  }
 0x321   : > { %v5674_v52 = vadd.f32 %v3863_v40, %v2608_v33  ;;  %v5576_v12 = vpop.f32.mrb[2].mxu1 }
 0x322   : > { %v4031_v34 = vmul.f32 %v5673_v50, %v7123_v32  ;;  %v5675_v21 = vadd.f32 %v5576_v12, %v5372_v23  ;;  %v3866_v3 = vpop.f32.mrb[3].mxu1 }
 0x323   : > { %v4029_v35 = vmul.f32 %v5674_v52, %v7123_v32  ;;  %v5676_v25 = vadd.f32 %v3866_v3, %v2611_v44 }
 0x324   : > { %v4070_v61 = vadd.f32 %v7128_v46, %v4031_v34  ;;  %v4032_v31 = vmul.f32 %v5675_v21, %v7123_v32 }
 0x325   : > { %v4068_v17 = vadd.f32 %v7128_v46, %v4029_v35  ;;  %v4030_v20 = vmul.f32 %v5676_v25, %v7123_v32 }
 0x326   : > { %v4071_v6 = vadd.f32 %v7128_v46, %v4032_v31  ;;  %v4102_v48 = vmax.f32 %v4070_v61, 0.0 }
 0x327   : > { %v4069_v56 = vadd.f32 %v7128_v46, %v4030_v20  ;;  %v5579_v47 = vpop.f32.mrb[4].mxu1  ;;  %v4100_v62 = vmax.f32 %v4068_v17, 0.0 }
 0x328   : > { %v4103_v13 = vmax.f32 %v4071_v6, 0.0  ;;  %v5677_v5 = vadd.f32 %v5579_v47, %v5375_v19  ;;  %v3879_v37 = vpop.f32.mrb[5].mxu1 }
 0x329   : > { %v4101_v49 = vmax.f32 %v4069_v56, 0.0  ;;  %v5678_v0 = vadd.f32 %v3879_v37, %v7040_v45  ;;  %v5580_v9 = vpop.f32.mrb[6].mxu1 }
 0x32a   : > { %v4133_v28 = vpack.c.bf16 %v4103_v13, %v4102_v48  ;;  %v4035_v60 = vmul.f32 %v5677_v5, %v7123_v32  ;;  %v5679_v14 = vadd.f32 %v5580_v9, %v7042_v38  ;;  %v3882_v4 = vpop.f32.mrb[7].mxu1 }
 0x32b   : > { %v4132_v27 = vpack.c.bf16 %v4101_v49, %v4100_v62  ;;  %v4033_v33 = vmul.f32 %v5678_v0, %v7123_v32  ;;  %v5680_v23 = vadd.f32 %v3882_v4, %v7044_v58 }
 0x32c   : > { %v4074_v44 = vadd.f32 %v7128_v46, %v4035_v60  ;;  %v4036_v19 = vmul.f32 %v5679_v14, %v7123_v32 }
 0x32d   : > { %v4072_v45 = vadd.f32 %v7128_v46, %v4033_v33  ;;  %v4034_v50 = vmul.f32 %v5680_v23, %v7123_v32  ;;  %5607 = vmatprep.mubr.msk.bf16.mxu0 %vm528_vm1, %v4132_v27 }
 0x32e   : > { %v4075_v38 = vadd.f32 %v7128_v46, %v4036_v19  ;;  %5608 = vmatmul.mubr.msk.bf16.vlgmr.msra.gmra.mrb[64].mxu0 %vm528_vm1, %v4133_v28  ;;  %v4106_v52 = vmax.f32 %v4074_v44, 0.0 }
 0x32f   : > { %v4073_v40 = vadd.f32 %v7128_v46, %v4034_v50  ;;  %5640 = vmatpush3.bf16.msra.mxu0 %v4480_v10  ;;  %v5583_v58 = vpop.f32.mrb[8].mxu1  ;;  %v4104_v55 = vmax.f32 %v4072_v45, 0.0 }
 0x330   : > { %v4107_v12 = vmax.f32 %v4075_v38, 0.0  ;;  %v5681_v34 = vadd.f32 %v5583_v58, %v7050_v11  ;;  %v3895_v21 = vpop.f32.mrb[9].mxu1 }
 0x331   : > { %v4105_v3 = vmax.f32 %v4073_v40, 0.0  ;;  %v5682_v35 = vadd.f32 %v3895_v21, %v7052_v36  ;;  %v5584_v25 = vpop.f32.mrb[10].mxu1 }
 0x332   : > { %v4135_v61 = vpack.c.bf16 %v4107_v12, %v4106_v52  ;;  %v4039_v31 = vmul.f32 %v5681_v34, %v7123_v32  ;;  %v5683_v17 = vadd.f32 %v5584_v25, %v7054_v24  ;;  %v3898_v20 = vpop.f32.mrb[11].mxu1 }
 0x333   : > { %v4134_v6 = vpack.c.bf16 %v4105_v3, %v4104_v55  ;;  %v4037_v56 = vmul.f32 %v5682_v35, %v7123_v32  ;;  %v5684_v47 = vadd.f32 %v3898_v20, %v7056_v29 }
 0x334   : > { %v4078_v48 = vadd.f32 %v7128_v46, %v4039_v31  ;;  %v4040_v11 = vmul.f32 %v5683_v17, %v7123_v32 }
 0x335   : > { %v4076_v13 = vadd.f32 %v7128_v46, %v4037_v56  ;;  %v4038_v36 = vmul.f32 %v5684_v47, %v7123_v32  ;;  %5611 = vmatprep.mubr.msk.bf16.mxu0 %vm528_vm1, %v4134_v6 }
 0x336   : > { %v4079_v5 = vadd.f32 %v7128_v46, %v4040_v11  ;;  %5612 = vmatmul.mubr.msk.bf16.gmra.mrb[68].mxu0 %vm528_vm1, %v4135_v61  ;;  %v4110_v62 = vmax.f32 %v4078_v48, 0.0 }
 0x337   : > { %v4077_v24 = vadd.f32 %v7128_v46, %v4038_v36  ;;  %v5587_v37 = vpop.f32.mrb[12].mxu1  ;;  %v4108_v9 = vmax.f32 %v4076_v13, 0.0 }
 0x338   : > { %v4111_v49 = vmax.f32 %v4079_v5, 0.0  ;;  %v5685_v29 = vadd.f32 %v5587_v37, %v7062_v57  ;;  %v3911_v0 = vpop.f32.mrb[13].mxu1 }
 0x339   : > { %v4109_v28 = vmax.f32 %v4077_v24, 0.0  ;;  %v5686_v60 = vadd.f32 %v3911_v0, %v7064_v7  ;;  %v5588_v14 = vpop.f32.mrb[14].mxu1 }
 0x33a   : > { %v4137_v4 = vpack.c.bf16 %v4111_v49, %v4110_v62  ;;  %v4043_v27 = vmul.f32 %v5685_v29, %v7123_v32  ;;  %v5687_v33 = vadd.f32 %v5588_v14, %v7066_v51  ;;  %v3914_v23 = vpop.f32.mrb[15].mxu1 }
 0x33b   : > { %v4136_v44 = vpack.c.bf16 %v4109_v28, %v4108_v9  ;;  %v4041_v19 = vmul.f32 %v5686_v60, %v7123_v32  ;;  %v5688_v10 = vadd.f32 %v3914_v23, %v7068_v42 }
 0x33c   : > { %v4082_v45 = vadd.f32 %v7128_v46, %v4043_v27  ;;  %v4044_v57 = vmul.f32 %v5687_v33, %v7123_v32 }
 0x33d   : > { %v4080_v50 = vadd.f32 %v7128_v46, %v4041_v19  ;;  %v4042_v7 = vmul.f32 %v5688_v10, %v7123_v32  ;;  %5615 = vmatprep.mubr.msk.bf16.mxu0 %vm528_vm1, %v4136_v44 }
 0x33e   : > { %v4083_v38 = vadd.f32 %v7128_v46, %v4044_v57  ;;  %5616 = vmatmul.mubr.msk.bf16.gmra.mrb[72].mxu0 %vm528_vm1, %v4137_v4  ;;  %v4114_v58 = vmax.f32 %v4082_v45, 0.0 }
 0x33f   : > { %v4081_v51 = vadd.f32 %v7128_v46, %v4042_v7  ;;  %v5591_v40 = vpop.f32.mrb[16].mxu1  ;;  %v4112_v34 = vmax.f32 %v4080_v50, 0.0 }
 0x340   : > { %v4115_v52 = vmax.f32 %v4083_v38, 0.0  ;;  %v5689_v42 = vadd.f32 %v5591_v40, %v7074_v1  ;;  %v3927_v12 = vpop.f32.mrb[17].mxu1 }
 0x341   : > { %v4113_v21 = vmax.f32 %v4081_v51, 0.0  ;;  %v5690_v55 = vadd.f32 %v3927_v12, %v7076_v43  ;;  %v5592_v3 = vpop.f32.mrb[18].mxu1 }
 0x342   : > { %v4139_v35 = vpack.c.bf16 %v4115_v52, %v4114_v58  ;;  %v4047_v25 = vmul.f32 %v5689_v42, %v7123_v32  ;;  %v5691_v61 = vadd.f32 %v5592_v3, %v7078_v2  ;;  %v3930_v31 = vpop.f32.mrb[19].mxu1 }
 0x343   : > { %v4138_v17 = vpack.c.bf16 %v4113_v21, %v4112_v34  ;;  %v4045_v20 = vmul.f32 %v5690_v55, %v7123_v32  ;;  %v5692_v6 = vadd.f32 %v3930_v31, %v7080_v8 }
 0x344   : > { %v4086_v56 = vadd.f32 %v7128_v46, %v4047_v25  ;;  %v4048_v1 = vmul.f32 %v5691_v61, %v7123_v32 }
 0x345   : > { %v4084_v47 = vadd.f32 %v7128_v46, %v4045_v20  ;;  %v4046_v43 = vmul.f32 %v5692_v6, %v7123_v32  ;;  %5619 = vmatprep.mubr.msk.bf16.mxu0 %vm528_vm1, %v4138_v17 }
 0x346   : > { %v4087_v48 = vadd.f32 %v7128_v46, %v4048_v1  ;;  %5620 = vmatmul.mubr.msk.bf16.gmra.mrb[76].mxu0 %vm528_vm1, %v4139_v35  ;;  %v4118_v13 = vmax.f32 %v4086_v56, 0.0 }
 0x347   : > { %v4085_v2 = vadd.f32 %v7128_v46, %v4046_v43  ;;  %v5595_v11 = vpop.f32.mrb[20].mxu1  ;;  %v4116_v24 = vmax.f32 %v4084_v47, 0.0 }
 0x348   : > { %v4119_v36 = vmax.f32 %v4087_v48, 0.0  ;;  %v5693_v8 = vadd.f32 %v5595_v11, %v7086_v63  ;;  %v3943_v5 = vpop.f32.mrb[21].mxu1 }
 0x349   : > { %v4117_v37 = vmax.f32 %v4085_v2, 0.0  ;;  %v5694_v62 = vadd.f32 %v3943_v5, %v7088_v54  ;;  %v5596_v49 = vpop.f32.mrb[22].mxu1 }
 0x34a   : > { %v4141_v29 = vpack.c.bf16 %v4119_v36, %v4118_v13  ;;  %v4051_v0 = vmul.f32 %v5693_v8, %v7123_v32  ;;  %v5695_v9 = vadd.f32 %v5596_v49, %v7090_v41  ;;  %v3946_v28 = vpop.f32.mrb[23].mxu1 }
 0x34b   : > { %v4140_v60 = vpack.c.bf16 %v4117_v37, %v4116_v24  ;;  %v4049_v14 = vmul.f32 %v5694_v62, %v7123_v32  ;;  %v5696_v4 = vadd.f32 %v3946_v28, %v7092_v59  ;;  %v5972_v28 = vld [vmem:[%s6079_s28 + $0x20] sm:$0xff]  }
 0x34c   : > { %v4090_v27 = vadd.f32 %v7128_v46, %v4051_v0  ;;  %v4052_v63 = vmul.f32 %v5695_v9, %v7123_v32  ;;  %v5969_v0 = vld [vmem:[%s6079_s28 + $0x8] sm:$0xff]   ;;  %v5971_v9 = vld [vmem:[%s6079_s28 + $0x18] sm:$0xff]  }
 0x34d   : > { %v4088_v33 = vadd.f32 %v7128_v46, %v4049_v14  ;;  %v4050_v54 = vmul.f32 %v5696_v4, %v7123_v32  ;;  %5623 = vmatprep.mubr.msk.bf16.mxu0 %vm528_vm1, %v4140_v60  ;;  %v5973_v60 = vld [vmem:[%s6079_s28 + $0x28] sm:$0xff]   ;;  %v5974_v14 = vld [vmem:[%s6079_s28 + $0x30] sm:$0xff]   ;;  %v5975_v4 = vld [vmem:[%s6079_s28 + $0x38] sm:$0xff]  }
 0x34e   : > { %v4091_v23 = vadd.f32 %v7128_v46, %v4052_v63  ;;  %5624 = vmatmul.mubr.msk.bf16.gmra.mrb[80].mxu0 %vm528_vm1, %v4141_v29  ;;  %v4122_v19 = vmax.f32 %v4090_v27, 0.0  ;;  %v5976_v27 = vld [vmem:[%s6079_s28 + $0x40] sm:$0xff]   ;;  %v5977_v63 = vld [vmem:[%s6079_s28 + $0x48] sm:$0xff]  }
 0x34f   : > { %v4089_v41 = vadd.f32 %v7128_v46, %v4050_v54  ;;  %v5599_v44 = vpop.f32.mrb[24].mxu1  ;;  %v4120_v57 = vmax.f32 %v4088_v33, 0.0  ;;  %v5978_v33 = vld [vmem:[%s6079_s28 + $0x50] sm:$0xff]   ;;  %v5979_v54 = vld [vmem:[%s6079_s28 + $0x58] sm:$0xff]  }
 0x350   : > { %v4123_v10 = vmax.f32 %v4091_v23, 0.0  ;;  %v5697_v59 = vadd.f32 %v5599_v44, %v7098_v16  ;;  %v3959_v45 = vpop.f32.mrb[25].mxu1  ;;  %v5980_v23 = vld [vmem:[%s6079_s28 + $0x60] sm:$0xff]   ;;  %v5982_v44 = vld [vmem:[%s6079_s28 + $0x70] sm:$0xff]  }
 0x351   : > { %v4121_v50 = vmax.f32 %v4089_v41, 0.0  ;;  %v5698_v7 = vadd.f32 %v3959_v45, %v7100_v22  ;;  %v5600_v38 = vpop.f32.mrb[26].mxu1  ;;  %v5981_v41 = vld [vmem:[%s6079_s28 + $0x68] sm:$0xff]  }
 0x352   : > { %v4143_v51 = vpack.c.bf16 %v4123_v10, %v4122_v19  ;;  %v4055_v40 = vmul.f32 %v5697_v59, %v7123_v32  ;;  %v5699_v58 = vadd.f32 %v5600_v38, %v7102_v30  ;;  %v3962_v52 = vpop.f32.mrb[27].mxu1  ;;  %v5983_v19 = vld [vmem:[%s6079_s28 + $0x78] sm:$0xff]  }
 0x353   : > { %v4142_v42 = vpack.c.bf16 %v4121_v50, %v4120_v57  ;;  %v4053_v12 = vmul.f32 %v5698_v7, %v7123_v32  ;;  %v5700_v34 = vadd.f32 %v3962_v52, %v7104_v39 }
 0x354   : > { %v4094_v21 = vadd.f32 %v7128_v46, %v4055_v40  ;;  %v4056_v16 = vmul.f32 %v5699_v58, %v7123_v32 }
 0x355   : > { %v4092_v55 = vadd.f32 %v7128_v46, %v4053_v12  ;;  %v4054_v22 = vmul.f32 %v5700_v34, %v7123_v32  ;;  %5627 = vmatprep.mubr.msk.bf16.mxu0 %vm528_vm1, %v4142_v42 }
 0x356   : > { %v4095_v3 = vadd.f32 %v7128_v46, %v4056_v16  ;;  %5628 = vmatmul.mubr.msk.bf16.gmra.mrb[84].mxu0 %vm528_vm1, %v4143_v51  ;;  %v4126_v25 = vmax.f32 %v4094_v21, 0.0 }
 0x357   : > { %v4093_v30 = vadd.f32 %v7128_v46, %v4054_v22  ;;  %v5603_v35 = vpop.f32.mrb[28].mxu1  ;;  %v4124_v17 = vmax.f32 %v4092_v55, 0.0 }
 0x358   : > { %v4127_v61 = vmax.f32 %v4095_v3, 0.0  ;;  %v5701_v39 = vadd.f32 %v5603_v35, %v7108_v26  ;;  %v3975_v31 = vpop.f32.mrb[29].mxu1 }
 0x359   : > { %v4125_v20 = vmax.f32 %v4093_v30, 0.0  ;;  %v5702_v6 = vadd.f32 %v3975_v31, %v7110_v15  ;;  %v5604_v56 = vpop.f32.mrb[30].mxu1 }
 0x35a   : > { %v4145_v1 = vpack.c.bf16 %v4127_v61, %v4126_v25  ;;  %v4059_v47 = vmul.f32 %v5701_v39, %v7123_v32  ;;  %v5703_v43 = vadd.f32 %v5604_v56, %v7112_v53  ;;  %v3978_v48 = vpop.f32.mrb[31].mxu1  ;;  %v7313_v56 = vld [vmem:[%s7534_s8] ss:$0 sm:$0xff] }
 0x35b   : > { %v4144_v2 = vpack.c.bf16 %v4125_v20, %v4124_v17  ;;  %v4057_v11 = vmul.f32 %v5702_v6, %v7123_v32  ;;  %v5704_v13 = vadd.f32 %v3978_v48, %v7114_v18  ;;  %v7323_v48 = vld [vmem:[%s7535_s9] ss:$0 sm:$0xff] }
 0x35c   : > { %v4098_v36 = vadd.f32 %v7128_v46, %v4059_v47  ;;  %v4060_v26 = vmul.f32 %v5703_v43, %v7123_v32 }
 0x35d   : > { %v4096_v8 = vadd.f32 %v7128_v46, %v4057_v11  ;;  %v4058_v15 = vmul.f32 %v5704_v13, %v7123_v32  ;;  %5631 = vmatprep.mubr.msk.bf16.mxu0 %vm528_vm1, %v4144_v2  ;;  %v5968_v32 = vld [vmem:[%s6079_s28] sm:$0xff]  }
 0x35e   : > { %v4099_v53 = vadd.f32 %v7128_v46, %v4060_v26  ;;  %5632 = vmatmul.mubr.msk.bf16.gmra.mrb[88].mxu0 %vm528_vm1, %v4145_v1  ;;  %v4130_v5 = vmax.f32 %v4098_v36, 0.0 }
 0x35f   : > { %v4097_v18 = vadd.f32 %v7128_v46, %v4058_v15  ;;  %v4128_v37 = vmax.f32 %v4096_v8, 0.0  ;;  %v5970_v46 = vld [vmem:[%s6079_s28 + $0x10] sm:$0xff]  }
 0x360   : > { %v4131_v24 = vmax.f32 %v4099_v53, 0.0  ;;  %v7337_v53 = vld [vmem:[%s7537_s11] ss:$0 sm:$0xff] }
 0x361   : > { %v4129_v62 = vmax.f32 %v4097_v18, 0.0 }
 0x362   : > { %v4147_v49 = vpack.c.bf16 %v4131_v24, %v4130_v5 }
 0x363   : > { %v4146_v29 = vpack.c.bf16 %v4129_v62, %v4128_v37 }
 0x365   : > { %5635 = vmatprep.mubr.msk.bf16.mxu0 %vm528_vm1, %v4146_v29 }
 0x366   : > { %5636 = vmatmul.mubr.msk.bf16.gmra.mrb[92].mxu0 %vm528_vm1, %v4147_v49 }
 0x367   : > { %5641 = vmatprep.mubr.msk.bf16.mxu0 %vm528_vm1, %v5968_v32 }
 0x36e   : > { %5642 = vmatmul.mubr.msk.bf16.vlgmr.msra.gmra.mrb[96].mxu0 %vm528_vm1, %v5969_v0 }
 0x36f   : > { %5645 = vmatprep.mubr.msk.bf16.mxu0 %vm528_vm1, %v5970_v46 }
 0x376   : > { %5646 = vmatmul.mubr.msk.bf16.gmra.mrb[100].mxu0 %vm528_vm1, %v5971_v9 }
 0x377   : > { %5649 = vmatprep.mubr.msk.bf16.mxu0 %vm528_vm1, %v5972_v28 }
 0x37e   : > { %5650 = vmatmul.mubr.msk.bf16.gmra.mrb[104].mxu0 %vm528_vm1, %v5973_v60 }
 0x37f   : > { %5653 = vmatprep.mubr.msk.bf16.mxu0 %vm528_vm1, %v5974_v14 }
 0x386   : > { %5654 = vmatmul.mubr.msk.bf16.gmra.mrb[108].mxu0 %vm528_vm1, %v5975_v4 }
 0x387   : > { %5657 = vmatprep.mubr.msk.bf16.mxu0 %vm528_vm1, %v5976_v27 }
 0x38e   : > { %5658 = vmatmul.mubr.msk.bf16.gmra.mrb[112].mxu0 %vm528_vm1, %v5977_v63 }
 0x38f   : > { %5661 = vmatprep.mubr.msk.bf16.mxu0 %vm528_vm1, %v5978_v33 }
 0x396   : > { %5662 = vmatmul.mubr.msk.bf16.gmra.mrb[116].mxu0 %vm528_vm1, %v5979_v54 }
 0x397   : > { %5665 = vmatprep.mubr.msk.bf16.mxu0 %vm528_vm1, %v5980_v23 }
 0x39e   : > { %5666 = vmatmul.mubr.msk.bf16.gmra.mrb[120].mxu0 %vm528_vm1, %v5981_v41 }
 0x39f   : > { %5669 = vmatprep.mubr.msk.bf16.mxu0 %vm528_vm1, %v5982_v44 }
 0x3a6   : > { %5670 = vmatmul.mubr.msk.bf16.gmra.mrb[124].mxu0 %vm528_vm1, %v5983_v19 }
 0x401   : > { %v5609_v10 = vpop.f32.mrb[64].mxu0 }
 0x402   : > { %v4234_v59 = vpop.f32.mrb[65].mxu0  ;;  %v4370_v47 = vmul.f32 %v5609_v10, %v7313_v56 }
 0x403   : > { %v5610_v45 = vpop.f32.mrb[66].mxu0  ;;  %v4368_v2 = vmul.f32 %v7313_v56, %v4234_v59 }
 0x404   : > { %v4237_v57 = vpop.f32.mrb[67].mxu0  ;;  %v4371_v13 = vmul.f32 %v5610_v45, %v7313_v56  ;;  %v4409_v8 = vadd.f32 %v7323_v48, %v4370_v47 }
 0x405   : > { %v4369_v26 = vmul.f32 %v7313_v56, %v4237_v57  ;;  %v4407_v15 = vadd.f32 %v7323_v48, %v4368_v2 }
 0x406   : > { %v4410_v18 = vadd.f32 %v7323_v48, %v4371_v13  ;;  %v4441_v37 = vmax.f32 %v4409_v8, 0.0 }
 0x407   : > { %v4408_v5 = vadd.f32 %v7323_v48, %v4369_v26  ;;  %v4439_v32 = vmax.f32 %v4407_v15, 0.0 }
 0x408   : > { %v4442_v28 = vmax.f32 %v4410_v18, 0.0 }
 0x409   : > { %v5613_v50 = vpop.f32.mrb[68].mxu0  ;;  %v4440_v63 = vmax.f32 %v4408_v5, 0.0 }
 0x40a   : > { %v4250_v7 = vpop.f32.mrb[69].mxu0  ;;  %v4374_v62 = vmul.f32 %v5613_v50, %v7313_v56 }
 0x40b   : > { %v5614_v38 = vpop.f32.mrb[70].mxu0  ;;  %v4372_v0 = vmul.f32 %v7313_v56, %v4250_v7 }
 0x40c   : > { %v4253_v51 = vpop.f32.mrb[71].mxu0  ;;  %v4375_v60 = vmul.f32 %v5614_v38, %v7313_v56  ;;  %v4413_v41 = vadd.f32 %v7323_v48, %v4374_v62 }
 0x40d   : > { %v4373_v33 = vmul.f32 %v7313_v56, %v4253_v51  ;;  %v4411_v19 = vadd.f32 %v7323_v48, %v4372_v0 }
 0x40e   : > { %v4414_v59 = vadd.f32 %v7323_v48, %v4375_v60  ;;  %v4445_v50 = vmax.f32 %v4413_v41, 0.0 }
 0x40f   : > { %v4412_v45 = vadd.f32 %v7323_v48, %v4373_v33  ;;  %v4443_v47 = vmax.f32 %v4411_v19, 0.0 }
 0x410   : > { %v4446_v8 = vmax.f32 %v4414_v59, 0.0 }
 0x411   : > { %v7270_v40 = vpop.f32.mrb[72].mxu0 }
 0x412   : > { %v7272_v58 = vpop.f32.mrb[73].mxu0  ;;  %v4378_v7 = vmul.f32 %v7270_v40, %v7313_v56 }
 0x413   : > { %v7274_v52 = vpop.f32.mrb[74].mxu0  ;;  %v4376_v2 = vmul.f32 %v7313_v56, %v7272_v58 }
 0x414   : > { %v7276_v42 = vpop.f32.mrb[75].mxu0  ;;  %v4379_v15 = vmul.f32 %v7274_v52, %v7313_v56 }
 0x416   : > { %v4418_v0 = vadd.f32 %v7323_v48, %v4379_v15 }
 0x419   : > { %v7278_v12 = vpop.f32.mrb[76].mxu0 }
 0x41a   : > { %v7280_v34 = vpop.f32.mrb[77].mxu0 }
 0x41b   : > { %v7282_v21 = vpop.f32.mrb[78].mxu0 }
 0x41c   : > { %v7284_v16 = vpop.f32.mrb[79].mxu0 }
 0x421   : > { %v7286_v55 = vpop.f32.mrb[80].mxu0 }
 0x422   : > { %v7288_v22 = vpop.f32.mrb[81].mxu0 }
 0x423   : > { %v7290_v3 = vpop.f32.mrb[82].mxu0 }
 0x424   : > { %v7292_v30 = vpop.f32.mrb[83].mxu0 }
 0x429   : > { %v7294_v35 = vpop.f32.mrb[84].mxu0 }
 0x42a   : > { %v7296_v25 = vpop.f32.mrb[85].mxu0 }
 0x42b   : > { %v7298_v61 = vpop.f32.mrb[86].mxu0 }
 0x42c   : > { %v7300_v39 = vpop.f32.mrb[87].mxu0 }
 0x431   : > { %v7302_v31 = vpop.f32.mrb[88].mxu0 }
 0x432   : > { %v7304_v17 = vpop.f32.mrb[89].mxu0 }
 0x433   : > { %v7306_v20 = vpop.f32.mrb[90].mxu0 }
 0x434   : > { %v7308_v6 = vpop.f32.mrb[91].mxu0 }
 0x439   : > { %v7315_v1 = vpop.f32.mrb[92].mxu0 }
 0x43a   : > { %v7318_v43 = vpop.f32.mrb[93].mxu0 }
 0x43b   : > { %v7326_v11 = vpop.f32.mrb[94].mxu0 }
 0x43c   : > { %v7329_v36 = vpop.f32.mrb[95].mxu0 }
 0x441   : > { %v5643_v24 = vpop.f32.mrb[96].mxu0 }
 0x442   : > { %v4525_v49 = vadd.f32 %v5643_v24, %v7337_v53  ;;  %v4516_v29 = vpop.f32.mrb[97].mxu0  ;;  %v4444_v24 = vmax.f32 %v4412_v45, 0.0 }
 0x443   : > { %v4517_v46 = vadd.f32 %v7337_v53, %v4516_v29  ;;  %v5644_v9 = vpop.f32.mrb[98].mxu0 }
 0x444   : > { %v4645_v14 = vadd.f32 %v4525_v49, %v4441_v37  ;;  %v4528_v4 = vadd.f32 %v5644_v9, %v7337_v53  ;;  %v4519_v27 = vpop.f32.mrb[99].mxu0  ;;  %v4377_v37 = vmul.f32 %v7313_v56, %v7276_v42  ;;  %v4417_v49 = vadd.f32 %v7323_v48, %v4378_v7 }
 0x445   : > { %v4643_v54 = vadd.f32 %v4517_v46, %v4439_v32  ;;  %v4520_v23 = vadd.f32 %v7337_v53, %v4519_v27  ;;  %v4415_v32 = vadd.f32 %v7323_v48, %v4376_v2  ;;  %v4380_v27 = vmul.f32 %v7313_v56, %v7280_v34 }
 0x446   : > { %4678 = vst.msk [vmem:[%s7348_s19 + $0x10] sm:$0xff] %vm4675_vm0, %v4645_v14  ;;  %v4646_v44 = vadd.f32 %v4528_v4, %v4442_v28  ;;  %v4416_v46 = vadd.f32 %v7323_v48, %v4377_v37  ;;  %v4449_v9 = vmax.f32 %v4417_v49, 0.0  ;;  %v4382_v28 = vmul.f32 %v7278_v12, %v7313_v56 }
 0x447   : > { %4676 = vst.msk [vmem:[%s7348_s19] sm:$0xff] %vm4675_vm0, %v4643_v54  ;;  %v4644_v10 = vadd.f32 %v4520_v23, %v4440_v63  ;;  %v4447_v4 = vmax.f32 %v4415_v32, 0.0  ;;  %v4450_v54 = vmax.f32 %v4418_v0, 0.0  ;;  %v4383_v23 = vmul.f32 %v7282_v21, %v7313_v56 }
 0x448   : > { %4679 = vst.msk [vmem:[%s7348_s19 + $0x18] sm:$0xff] %vm4675_vm0, %v4646_v44  ;;  %v4448_v19 = vmax.f32 %v4416_v46, 0.0  ;;  %v4421_v45 = vadd.f32 %v7323_v48, %v4382_v28 }
 0x449   : > { %4677 = vst.msk [vmem:[%s7348_s19 + $0x8] sm:$0xff] %vm4675_vm0, %v4644_v10  ;;  %v5647_v57 = vpop.f32.mrb[100].mxu0  ;;  %v4381_v10 = vmul.f32 %v7313_v56, %v7284_v16  ;;  %v4422_v7 = vadd.f32 %v7323_v48, %v4383_v23 }
 0x44a   : > { %v4541_v38 = vadd.f32 %v5647_v57, %v7337_v53  ;;  %v4532_v51 = vpop.f32.mrb[101].mxu0 }
 0x44b   : > { %v4533_v13 = vadd.f32 %v7337_v53, %v4532_v51  ;;  %v5648_v26 = vpop.f32.mrb[102].mxu0  ;;  %v4453_v51 = vmax.f32 %v4421_v45, 0.0 }
 0x44c   : > { %v4649_v18 = vadd.f32 %v4541_v38, %v4445_v50  ;;  %v4544_v40 = vadd.f32 %v5648_v26, %v7337_v53  ;;  %v4535_v5 = vpop.f32.mrb[103].mxu0  ;;  %v4419_v50 = vadd.f32 %v7323_v48, %v4380_v27  ;;  %v4420_v38 = vadd.f32 %v7323_v48, %v4381_v10 }
 0x44d   : > { %v4647_v62 = vadd.f32 %v4533_v13, %v4443_v47  ;;  %v4536_v58 = vadd.f32 %v7337_v53, %v4535_v5  ;;  %v4386_v47 = vmul.f32 %v7286_v55, %v7313_v56  ;;  %v4387_v5 = vmul.f32 %v7290_v3, %v7313_v56 }
 0x44e   : > { %4682 = vst.msk [vmem:[%s7348_s19 + $0x30] sm:$0xff] %vm4675_vm0, %v4649_v18  ;;  %v4650_v29 = vadd.f32 %v4544_v40, %v4446_v8  ;;  %v4451_v26 = vmax.f32 %v4419_v50, 0.0  ;;  %v4384_v8 = vmul.f32 %v7313_v56, %v7288_v22  ;;  %v4454_v40 = vmax.f32 %v4422_v7, 0.0 }
 0x44f   : > { %4680 = vst.msk [vmem:[%s7348_s19 + $0x20] sm:$0xff] %vm4675_vm0, %v4647_v62  ;;  %v4648_v52 = vadd.f32 %v4536_v58, %v4444_v24  ;;  %v4452_v62 = vmax.f32 %v4420_v38, 0.0  ;;  %v4385_v58 = vmul.f32 %v7313_v56, %v7292_v30  ;;  %v4426_v0 = vadd.f32 %v7323_v48, %v4387_v5 }
 0x450   : > { %4683 = vst.msk [vmem:[%s7348_s19 + $0x38] sm:$0xff] %vm4675_vm0, %v4650_v29  ;;  %v4425_v29 = vadd.f32 %v7323_v48, %v4386_v47 }
 0x451   : > { %4681 = vst.msk [vmem:[%s7348_s19 + $0x28] sm:$0xff] %vm4675_vm0, %v4648_v52  ;;  %v5651_v42 = vpop.f32.mrb[104].mxu0  ;;  %v4423_v52 = vadd.f32 %v7323_v48, %v4384_v8  ;;  %v4424_v46 = vadd.f32 %v7323_v48, %v4385_v58 }
 0x452   : > { %v4557_v60 = vadd.f32 %v5651_v42, %v7337_v53  ;;  %v4548_v14 = vpop.f32.mrb[105].mxu0  ;;  %v4457_v42 = vmax.f32 %v4425_v29, 0.0 }
 0x453   : > { %v4549_v63 = vadd.f32 %v7337_v53, %v4548_v14  ;;  %v5652_v33 = vpop.f32.mrb[106].mxu0  ;;  %v4455_v14 = vmax.f32 %v4423_v52, 0.0 }
 0x454   : > { %v4653_v41 = vadd.f32 %v4557_v60, %v4449_v9  ;;  %v4560_v12 = vadd.f32 %v5652_v33, %v7337_v53  ;;  %v4551_v44 = vpop.f32.mrb[107].mxu0  ;;  %v4390_v9 = vmul.f32 %v7294_v35, %v7313_v56  ;;  %v4458_v33 = vmax.f32 %v4426_v0, 0.0 }
 0x455   : > { %v4651_v59 = vadd.f32 %v4549_v63, %v4447_v4  ;;  %v4552_v34 = vadd.f32 %v7337_v53, %v4551_v44  ;;  %v4388_v4 = vmul.f32 %v7313_v56, %v7296_v25  ;;  %v4389_v44 = vmul.f32 %v7313_v56, %v7300_v39 }
 0x456   : > { %4686 = vst.msk [vmem:[%s7348_s19 + $0x50] sm:$0xff] %vm4675_vm0, %v4653_v41  ;;  %v4654_v57 = vadd.f32 %v4560_v12, %v4450_v54  ;;  %v4391_v54 = vmul.f32 %v7298_v61, %v7313_v56  ;;  %v4456_v12 = vmax.f32 %v4424_v46, 0.0  ;;  %v4429_v10 = vadd.f32 %v7323_v48, %v4390_v9 }
 0x457   : > { %4684 = vst.msk [vmem:[%s7348_s19 + $0x40] sm:$0xff] %vm4675_vm0, %v4651_v59  ;;  %v4652_v21 = vadd.f32 %v4552_v34, %v4448_v19  ;;  %v4427_v34 = vadd.f32 %v7323_v48, %v4388_v4 }
 0x458   : > { %4687 = vst.msk [vmem:[%s7348_s19 + $0x58] sm:$0xff] %vm4675_vm0, %v4654_v57  ;;  %v4430_v45 = vadd.f32 %v7323_v48, %v4391_v54  ;;  %v4428_v57 = vadd.f32 %v7323_v48, %v4389_v44  ;;  %v4461_v50 = vmax.f32 %v4429_v10, 0.0 }
 0x459   : > { %4685 = vst.msk [vmem:[%s7348_s19 + $0x48] sm:$0xff] %vm4675_vm0, %v4652_v21  ;;  %v5655_v16 = vpop.f32.mrb[108].mxu0  ;;  %v4394_v21 = vmul.f32 %v7302_v31, %v7313_v56 }
 0x45a   : > { %v4573_v2 = vadd.f32 %v5655_v16, %v7337_v53  ;;  %v4564_v13 = vpop.f32.mrb[109].mxu0  ;;  %v4459_v16 = vmax.f32 %v4427_v34, 0.0 }
 0x45b   : > { %v4565_v15 = vadd.f32 %v7337_v53, %v4564_v13  ;;  %v5656_v18 = vpop.f32.mrb[110].mxu0  ;;  %v4462_v13 = vmax.f32 %v4430_v45, 0.0 }
 0x45c   : > { %v4657_v24 = vadd.f32 %v4573_v2, %v4453_v51  ;;  %v4576_v55 = vadd.f32 %v5656_v18, %v7337_v53  ;;  %v4567_v37 = vpop.f32.mrb[111].mxu0  ;;  %v4392_v51 = vmul.f32 %v7313_v56, %v7304_v17  ;;  %v4460_v18 = vmax.f32 %v4428_v57, 0.0 }
 0x45d   : > { %v4655_v49 = vadd.f32 %v4565_v15, %v4451_v26  ;;  %v4568_v22 = vadd.f32 %v7337_v53, %v4567_v37  ;;  %v4395_v26 = vmul.f32 %v7306_v20, %v7313_v56 }
 0x45e   : > { %4690 = vst.msk [vmem:[%s7348_s19 + $0x70] sm:$0xff] %vm4675_vm0, %v4657_v24  ;;  %v4658_v32 = vadd.f32 %v4576_v55, %v4454_v40  ;;  %v4393_v40 = vmul.f32 %v7313_v56, %v7308_v6  ;;  %v4433_v24 = vadd.f32 %v7323_v48, %v4394_v21  ;;  %v4431_v37 = vadd.f32 %v7323_v48, %v4392_v51 }
 0x45f   : > { %4688 = vst.msk [vmem:[%s7348_s19 + $0x60] sm:$0xff] %vm4675_vm0, %v4655_v49  ;;  %v4656_v3 = vadd.f32 %v4568_v22, %v4452_v62  ;;  %v4434_v62 = vadd.f32 %v7323_v48, %v4395_v26  ;;  %v4398_v22 = vmul.f32 %v7315_v1, %v7313_v56 }
 0x460   : > { %4691 = vst.msk [vmem:[%s7348_s19 + $0x78] sm:$0xff] %vm4675_vm0, %v4658_v32  ;;  %v4432_v58 = vadd.f32 %v7323_v48, %v4393_v40  ;;  %v4465_v49 = vmax.f32 %v4433_v24, 0.0  ;;  %v4463_v52 = vmax.f32 %v4431_v37, 0.0 }
 0x461   : > { %4689 = vst.msk [vmem:[%s7348_s19 + $0x68] sm:$0xff] %vm4675_vm0, %v4656_v3  ;;  %v5659_v30 = vpop.f32.mrb[112].mxu0  ;;  %v4396_v3 = vmul.f32 %v7313_v56, %v7318_v43 }
 0x462   : > { %v4589_v28 = vadd.f32 %v5659_v30, %v7337_v53  ;;  %v4580_v60 = vpop.f32.mrb[113].mxu0  ;;  %v4466_v30 = vmax.f32 %v4434_v62, 0.0 }
 0x463   : > { %v4581_v27 = vadd.f32 %v7337_v53, %v4580_v60  ;;  %v5660_v63 = vpop.f32.mrb[114].mxu0  ;;  %v4464_v60 = vmax.f32 %v4432_v58, 0.0 }
 0x464   : > { %v4661_v23 = vadd.f32 %v4589_v28, %v4457_v42  ;;  %v4592_v35 = vadd.f32 %v5660_v63, %v7337_v53  ;;  %v4583_v41 = vpop.f32.mrb[115].mxu0  ;;  %v4399_v42 = vmul.f32 %v7326_v11, %v7313_v56 }
 0x465   : > { %v4659_v19 = vadd.f32 %v4581_v27, %v4455_v14  ;;  %v4584_v25 = vadd.f32 %v7337_v53, %v4583_v41  ;;  %v4397_v14 = vmul.f32 %v7313_v56, %v7329_v36  ;;  %v4437_v27 = vadd.f32 %v7323_v48, %v4398_v22 }
 0x466   : > { %4694 = vst.msk [vmem:[%s7348_s19 + $0x90] sm:$0xff] %vm4675_vm0, %v4661_v23  ;;  %v4662_v59 = vadd.f32 %v4592_v35, %v4458_v33  ;;  %v4435_v33 = vadd.f32 %v7323_v48, %v4396_v3  ;;  %v4438_v54 = vadd.f32 %v7323_v48, %v4399_v42 }
 0x467   : > { %4692 = vst.msk [vmem:[%s7348_s19 + $0x80] sm:$0xff] %vm4675_vm0, %v4659_v19  ;;  %v4660_v61 = vadd.f32 %v4584_v25, %v4456_v12  ;;  %v4436_v23 = vadd.f32 %v7323_v48, %v4397_v14  ;;  %v4469_v36 = vmax.f32 %v4437_v27, 0.0 }
 0x468   : > { %4695 = vst.msk [vmem:[%s7348_s19 + $0x98] sm:$0xff] %vm4675_vm0, %v4662_v59  ;;  %v4467_v12 = vmax.f32 %v4435_v33, 0.0  ;;  %v4470_v25 = vmax.f32 %v4438_v54, 0.0 }
 0x469   : > { %4693 = vst.msk [vmem:[%s7348_s19 + $0x88] sm:$0xff] %vm4675_vm0, %v4660_v61  ;;  %v5663_v39 = vpop.f32.mrb[116].mxu0  ;;  %v4468_v34 = vmax.f32 %v4436_v23, 0.0 }
 0x46a   : > { %v4605_v7 = vadd.f32 %v5663_v39, %v7337_v53  ;;  %v4596_v38 = vpop.f32.mrb[117].mxu0 }
 0x46b   : > { %v4597_v47 = vadd.f32 %v7337_v53, %v4596_v38  ;;  %v5664_v2 = vpop.f32.mrb[118].mxu0 }
 0x46c   : > { %v4665_v8 = vadd.f32 %v4605_v7, %v4461_v50  ;;  %v4608_v31 = vadd.f32 %v5664_v2, %v7337_v53  ;;  %v4599_v15 = vpop.f32.mrb[119].mxu0 }
 0x46d   : > { %v4663_v5 = vadd.f32 %v4597_v47, %v4459_v16  ;;  %v4600_v17 = vadd.f32 %v7337_v53, %v4599_v15 }
 0x46e   : > { %4698 = vst.msk [vmem:[%s7348_s19 + $0xb0] sm:$0xff] %vm4675_vm0, %v4665_v8  ;;  %v4666_v55 = vadd.f32 %v4608_v31, %v4462_v13 }
 0x46f   : > { %4696 = vst.msk [vmem:[%s7348_s19 + $0xa0] sm:$0xff] %vm4675_vm0, %v4663_v5  ;;  %v4664_v20 = vadd.f32 %v4600_v17, %v4460_v18 }
 0x470   : > { %4699 = vst.msk [vmem:[%s7348_s19 + $0xb8] sm:$0xff] %vm4675_vm0, %v4666_v55 }
 0x471   : > { %4697 = vst.msk [vmem:[%s7348_s19 + $0xa8] sm:$0xff] %vm4675_vm0, %v4664_v20  ;;  %v5667_v6 = vpop.f32.mrb[120].mxu0 }
 0x472   : > { %v4621_v29 = vadd.f32 %v5667_v6, %v7337_v53  ;;  %v4612_v32 = vpop.f32.mrb[121].mxu0 }
 0x473   : > { %v4613_v0 = vadd.f32 %v7337_v53, %v4612_v32  ;;  %v5668_v46 = vpop.f32.mrb[122].mxu0 }
 0x474   : > { %v4669_v9 = vadd.f32 %v4621_v29, %v4465_v49  ;;  %v4624_v1 = vadd.f32 %v5668_v46, %v7337_v53  ;;  %v4615_v28 = vpop.f32.mrb[123].mxu0 }
 0x475   : > { %v4667_v4 = vadd.f32 %v4613_v0, %v4463_v52  ;;  %v4616_v43 = vadd.f32 %v7337_v53, %v4615_v28 }
 0x476   : > { %4702 = vst.msk [vmem:[%s7348_s19 + $0xd0] sm:$0xff] %vm4675_vm0, %v4669_v9  ;;  %v4670_v63 = vadd.f32 %v4624_v1, %v4466_v30 }
 0x477   : > { %4700 = vst.msk [vmem:[%s7348_s19 + $0xc0] sm:$0xff] %vm4675_vm0, %v4667_v4  ;;  %v4668_v11 = vadd.f32 %v4616_v43, %v4464_v60 }
 0x478   : > { %4703 = vst.msk [vmem:[%s7348_s19 + $0xd8] sm:$0xff] %vm4675_vm0, %v4670_v63 }
 0x479   : > { %4701 = vst.msk [vmem:[%s7348_s19 + $0xc8] sm:$0xff] %vm4675_vm0, %v4668_v11  ;;  %v5671_v56 = vpop.f32.mrb[124].mxu0 }
 0x47a   : > { %v4637_v35 = vadd.f32 %v5671_v56, %v7337_v53  ;;  %v4628_v41 = vpop.f32.mrb[125].mxu0 }
 0x47b   : > { %v4629_v44 = vadd.f32 %v7337_v53, %v4628_v41  ;;  %v5672_v19 = vpop.f32.mrb[126].mxu0 }
 0x47c   : > { %v4673_v10 = vadd.f32 %v4637_v35, %v4469_v36  ;;  %v4640_v59 = vadd.f32 %v5672_v19, %v7337_v53  ;;  %v4631_v48 = vpop.f32.mrb[127].mxu0 }
 0x47d   : > { %v4671_v61 = vadd.f32 %v4629_v44, %v4467_v12  ;;  %v4632_v45 = vadd.f32 %v7337_v53, %v4631_v48 }
 0x47e   : > { %4706 = vst.msk [vmem:[%s7348_s19 + $0xf0] sm:$0xff] %vm4675_vm0, %v4673_v10  ;;  %v4674_v57 = vadd.f32 %v4640_v59, %v4470_v25 }
 0x47f   : > { %4704 = vst.msk [vmem:[%s7348_s19 + $0xe0] sm:$0xff] %vm4675_vm0, %v4671_v61  ;;  %v4672_v39 = vadd.f32 %v4632_v45, %v4468_v34 }
 0x480   : > { %4707 = vst.msk [vmem:[%s7348_s19 + $0xf8] sm:$0xff] %vm4675_vm0, %v4674_v57 }
 0x481   : > { %4705 = vst.msk [vmem:[%s7348_s19 + $0xe8] sm:$0xff] %vm4675_vm0, %v4672_v39 }
 0x482 PF: > { %s22_s21 = sadd.s32 1, %s5990_s21  }
 0x483   : > { %p19_p4 = scmp.ge.s32.totalorder %s22_s21, 4  }
 0x485   :  { %21 = sbr.rel (!%p19_p4) target bundleno = 1 (0x1), region = 106 }

</bundles_post_ra>
